<compile_context>
chip_gen: v7x
topology: tpu7x:2x2x1
jax: 0.10.0
libtpu: 0.0.40
codegen_flags: <defaults>
</compile_context>

<pallas_src>
import functools

import jax
import jax.numpy as jnp
import numpy as np
from jax import lax
from jax.experimental import pallas as pl
from jax.experimental.pallas import tpu as pltpu


def _round_up(v, m):
    return (v + m - 1) // m * m


def _oab_kernel(m_real,
                x_ref,                       # (C8, TILE)       channel-major x tile
                k_ref, v_ref,                # (M_pad, K_pad) / (K_pad, M_pad) per batch
                wp1, bp1, wp2, bp2,          # f_pixel (pre-transposed, scale folded in 2nd)
                wu, bu,                      # f_up    (pre-transposed)
                o_ref):                      # (C_pad, TILE)
    f32 = jnp.float32
    cdt = k_ref.dtype                        # MXU operand dtype (bf16 in production)

    # Pixel-side (query) projection, channel-major: (K_pad, C8) @ (C8, TILE).
    x = x_ref[...].astype(cdt)
    q1 = jnp.maximum(jnp.dot(wp1[...], x, preferred_element_type=f32) + bp1[...], 0.0)
    q = jnp.maximum(jnp.dot(wp2[...], q1.astype(cdt),
                            preferred_element_type=f32) + bp2[...], 0.0)   # (K_pad, TILE)

    # sim = k_tok @ q_ct -> (M_pad, TILE); softmax over the object axis (sublanes).
    # Note: M_pad is often just 128, half-filling the 256-wide MXU on v6e/v7x;
    # these two matmuls are a small fraction of total FLOPs, so we accept it.
    sim = jnp.dot(k_ref[...], q.astype(cdt), preferred_element_type=f32)

    # Mask padded object tokens out of the softmax (padded k rows give sim==0,
    # not -inf, so this mask is required for correctness).
    if m_real < sim.shape[0]:
        ridx = lax.broadcasted_iota(jnp.int32, sim.shape, 0)
        sim = jnp.where(ridx < m_real, sim, -jnp.inf)

    sim = sim - jnp.max(sim, axis=0, keepdims=True)
    e = jnp.exp(sim)
    denom = jnp.sum(e, axis=0, keepdims=True)                 # (1, TILE)
    inv = pl.reciprocal(denom, approx=True)                   # EUP slot, ~free

    m_pad, k_pad = k_ref.shape
    if m_pad <= k_pad:
        # Normalize the narrower tensor (fewer VPU multiplies).
        e = e * inv
        ctx = jnp.dot(v_ref[...], e.astype(cdt), preferred_element_type=f32)
    else:
        ctx = jnp.dot(v_ref[...], e.astype(cdt), preferred_element_type=f32)
        ctx = ctx * inv                                       # (K_pad, TILE)

    out = jnp.maximum(jnp.dot(wu[...], ctx.astype(cdt),
                              preferred_element_type=f32) + bu[...], 0.0)  # (C_pad, TILE)
    o_ref[...] = out.astype(o_ref.dtype)


def _fold_bn(w, gamma, beta, mean, var, eps=1e-5):
    """Fold conv(1x1, no bias) + BatchNorm(eval) into (W_eff, bias)."""
    scale = gamma / jnp.sqrt(var + eps)        # (Cout,)
    w_eff = w * scale[None, :]                 # (Cin, Cout)
    bias = (beta - mean * scale)[None, :]      # (1, Cout)
    return w_eff, bias


def object_attention_block(x_nchw, proxy_nchw, params, key_channels, *,
                           tile_hw=2048, compute_dtype=jnp.bfloat16,
                           out_dtype=None):
    """x_nchw: (N, C, H, W), proxy_nchw: (N, C, Hp, Wp). Returns (N, C, H, W).

    Pass out_dtype=jnp.bfloat16 to halve the output writeback when the
    consumer computes in bf16 (default keeps the input dtype, like PyTorch).
    """
    N, C, H, W = x_nchw.shape
    _, _, Hp, Wp = proxy_nchw.shape
    HW, M = H * W, Hp * Wp
    K = key_channels
    out_dtype = x_nchw.dtype if out_dtype is None else out_dtype

    C8 = _round_up(C, 8)        # x sublane pad (usually == C, so no copy)
    C_pad = _round_up(C, 128)   # output-channel pad (lane-dense weight/out cols)
    K_pad = _round_up(K, 128)
    M_pad = _round_up(M, 128)

    # --- Generation-aware tile cap / VMEM limit -------------------------------
    try:
        info = pltpu.get_tpu_info()
        vmem_cap = int(getattr(info, "vmem_capacity_bytes", 64 * 1024 * 1024))
    except Exception:  # interpret mode / unknown device
        vmem_cap = 64 * 1024 * 1024
    # in+out double-buffer budget: ~20 MiB on 128-MiB parts, ~10 MiB on v7x.
    io_budget = (20 << 20) if vmem_cap >= (96 << 20) else (10 << 20)
    x_bytes = jnp.dtype(x_nchw.dtype).itemsize
    o_bytes = jnp.dtype(out_dtype).itemsize
    row_bytes = C8 * x_bytes + C_pad * o_bytes
    tile_cap = max(128, (io_budget // (2 * row_bytes)) // 128 * 128)
    tile = min(_round_up(tile_hw, 128), tile_cap, _round_up(HW, 128))
    HW_pad = _round_up(HW, tile)
    n_tiles = HW_pad // tile

    # --- x stays channel-major; no transpose, pad only if mis-aligned ---------
    x_flat = x_nchw.reshape(N, C, HW)
    if C8 != C or HW_pad != HW:
        x_flat = jnp.pad(x_flat, ((0, 0), (0, C8 - C), (0, HW_pad - HW)))
    # keep native dtype; the kernel casts per-tile (saves an HBM pass over x)

    # --- Fold BN (eval mode) into the 1x1-conv weights -------------------------
    wp1, bp1 = _fold_bn(params["fp_w1"], *params["fp_bn1"])
    wp2, bp2 = _fold_bn(params["fp_w2"], *params["fp_bn2"])
    att_scale = float(K) ** -0.5                # fold attention scale into f_pixel layer 2
    wp2, bp2 = wp2 * att_scale, bp2 * att_scale
    wo1, bo1 = _fold_bn(params["fo_w1"], *params["fo_bn1"])
    wo2, bo2 = _fold_bn(params["fo_w2"], *params["fo_bn2"])
    wd, bd = _fold_bn(params["fd_w"], *params["fd_bn"])
    wu, bu = _fold_bn(params["fu_w"], *params["fu_bn"])

    # --- Proxy-side k/v hoisted to XLA (tiny: O(N*M*C*K)) ----------------------
    p_tok = jnp.transpose(proxy_nchw.reshape(N, C, M), (0, 2, 1)).astype(jnp.float32)
    k_tok = jnp.maximum(jnp.maximum(p_tok @ wo1 + bo1, 0.0) @ wo2 + bo2, 0.0)   # (N, M, K)
    v_tok = jnp.maximum(p_tok @ wd + bd, 0.0)                                   # (N, M, K)
    k_tok = jnp.pad(k_tok, ((0, 0), (0, M_pad - M), (0, K_pad - K))).astype(compute_dtype)
    v_ct = jnp.pad(jnp.transpose(v_tok, (0, 2, 1)),
                   ((0, 0), (0, K_pad - K), (0, M_pad - M))).astype(compute_dtype)

    # --- Kernel weights: pre-transposed to channel-major, padded ---------------
    def pad_wt(w, rows, cols):     # (Cin, Cout) -> (Cout_pad, Cin_pad), compute dtype
        wt = w.T
        return jnp.pad(wt, ((0, rows - wt.shape[0]),
                            (0, cols - wt.shape[1]))).astype(compute_dtype)

    def pad_bt(b, rows):           # (1, Cout) -> column (Cout_pad, 1), f32 (acc dtype)
        bc = b.reshape(-1, 1)
        return jnp.pad(bc, ((0, rows - bc.shape[0]), (0, 0))).astype(jnp.float32)

    weights = [
        pad_wt(wp1, K_pad, C8), pad_bt(bp1, K_pad),
        pad_wt(wp2, K_pad, K_pad), pad_bt(bp2, K_pad),
        pad_wt(wu, C_pad, K_pad), pad_bt(bu, C_pad),
    ]

    def const_spec(a):
        nd = a.ndim
        return pl.BlockSpec(a.shape, lambda n, t, nd=nd: (0,) * nd)

    # --- Computed VMEM limit (generous margin, capped per generation) ----------
    cb = jnp.dtype(compute_dtype).itemsize
    io_bytes = 2 * tile * row_bytes                                   # x + out double buffers
    kv_bytes = 2 * 2 * M_pad * K_pad * cb                             # k + v double buffers
    w_bytes = 2 * sum(int(np.prod(w.shape)) * w.dtype.itemsize for w in weights)
    inter_bytes = tile * (C8 * cb + 3 * K_pad * 4 + 2 * M_pad * 4 + C_pad * 4)
    vmem_need = io_bytes + kv_bytes + w_bytes + inter_bytes + (4 << 20)
    vmem_limit = int(min(max(int(vmem_need * 1.5), 24 << 20), (vmem_cap * 7) // 8))

    # --- Cost hint --------------------------------------------------------------
    flops = 2 * N * HW_pad * (C8 * K_pad + K_pad * K_pad + 2 * K_pad * M_pad + K_pad * C_pad)
    bytes_accessed = int(
        x_flat.size * x_flat.dtype.itemsize
        + k_tok.size * k_tok.dtype.itemsize + v_ct.size * v_ct.dtype.itemsize
        + sum(int(np.prod(w.shape)) * w.dtype.itemsize for w in weights)
        + N * C_pad * HW_pad * o_bytes)

    out_cm = pl.pallas_call(
        functools.partial(_oab_kernel, M),
        out_shape=jax.ShapeDtypeStruct((N, C_pad, HW_pad), out_dtype),
        grid_spec=pltpu.PrefetchScalarGridSpec(
            num_scalar_prefetch=0,
            grid=(N, n_tiles),
            in_specs=[
                pl.BlockSpec((None, C8, tile), lambda n, t: (n, 0, t)),       # x tile
                pl.BlockSpec((None, M_pad, K_pad), lambda n, t: (n, 0, 0)),   # k (per batch)
                pl.BlockSpec((None, K_pad, M_pad), lambda n, t: (n, 0, 0)),   # v (per batch)
            ] + [const_spec(w) for w in weights],
            out_specs=pl.BlockSpec((None, C_pad, tile), lambda n, t: (n, 0, t)),
        ),
        compiler_params=pltpu.CompilerParams(
            # No cross-iteration scratch carry anymore -> both axes parallel
            # (megacore shards the HW tiles on v7x even for N == 1).
            dimension_semantics=("parallel", "parallel"),
            vmem_limit_bytes=vmem_limit,
        ),
        cost_estimate=pl.CostEstimate(
            flops=int(flops),
            transcendentals=int(N * HW_pad * M_pad),
            bytes_accessed=bytes_accessed),
    )(x_flat, k_tok, v_ct, *weights)

    # Strip padding (no-op copies when C/HW are already aligned) and reshape back.
    return out_cm[:, :C, :HW].reshape(N, C, H, W)


def _ref_forward(x_nchw, proxy_nchw, params, key_channels):
    """Pure-JAX reference matching the PyTorch forward (eval-mode BN, scale=1)."""
    N, C, H, W = x_nchw.shape
    _, _, Hp, Wp = proxy_nchw.shape
    HW, M = H * W, Hp * Wp

    x_t = jnp.transpose(x_nchw.reshape(N, C, HW), (0, 2, 1)).astype(jnp.float32)
    p_t = jnp.transpose(proxy_nchw.reshape(N, C, M), (0, 2, 1)).astype(jnp.float32)

    def cbr(t, w, bn):
        w_eff, b = _fold_bn(w, *bn)
        return jnp.maximum(t @ w_eff + b, 0.0)

    q = cbr(cbr(x_t, params["fp_w1"], params["fp_bn1"]),
            params["fp_w2"], params["fp_bn2"])
    k = cbr(cbr(p_t, params["fo_w1"], params["fo_bn1"]),
            params["fo_w2"], params["fo_bn2"])
    v = cbr(p_t, params["fd_w"], params["fd_bn"])

    sim = jnp.einsum("nqk,nmk->nqm", q, k) * (key_channels ** -0.5)
    sim = jax.nn.softmax(sim, axis=-1)
    ctx = jnp.einsum("nqm,nmk->nqk", sim, v)
    out = cbr(ctx, params["fu_w"], params["fu_bn"])
    return jnp.transpose(out, (0, 2, 1)).reshape(N, C, H, W)


def _init_params(key, in_channels, key_channels):
    C, K = in_channels, key_channels
    keys = jax.random.split(key, 32)
    it = iter(range(32))

    def conv_w(cin, cout):
        return (jax.random.normal(keys[next(it)], (cin, cout), jnp.float32)
                * (1.0 / np.sqrt(cin)))

    def bn(cf):
        gamma = 1.0 + 0.1 * jax.random.normal(keys[next(it)], (cf,), jnp.float32)
        beta = 0.1 * jax.random.normal(keys[next(it)], (cf,), jnp.float32)
        mean = 0.1 * jax.random.normal(keys[next(it)], (cf,), jnp.float32)
        var = jax.random.uniform(keys[next(it)], (cf,), jnp.float32, 0.5, 1.5)
        return (gamma, beta, mean, var)

    return {
        "fp_w1": conv_w(C, K), "fp_bn1": bn(K),
        "fp_w2": conv_w(K, K), "fp_bn2": bn(K),
        "fo_w1": conv_w(C, K), "fo_bn1": bn(K),
        "fo_w2": conv_w(K, K), "fo_bn2": bn(K),
        "fd_w":  conv_w(C, K), "fd_bn":  bn(K),
        "fu_w":  conv_w(K, C), "fu_bn":  bn(C),
    }


if __name__ == "__main__":
    in_channels = 4
    key_channels = 8
    N, H, W = 2, 16, 16
    Hp, Wp = 8, 1        # proxy = object-region features (N, C, num_regions, 1)

    root = jax.random.PRNGKey(0)
    kx, kp, kw = jax.random.split(root, 3)
    x = jax.random.normal(kx, (N, in_channels, H, W), jnp.float32)
    proxy = jax.random.normal(kp, (N, in_channels, Hp, Wp), jnp.float32)
    params = _init_params(kw, in_channels, key_channels)

    ref = _ref_forward(x, proxy, params, key_channels)

    # 1) f32-operand path, multi-tile grid: verifies padding / softmax mask /
    #    channel-major tiling tightly (slack for MXU precision + approx recip).
    out_f32 = object_attention_block(x, proxy, params, key_channels,
                                     tile_hw=128, compute_dtype=jnp.float32)
    out_f32 = jax.block_until_ready(out_f32)
    assert out_f32.shape == (N, in_channels, H, W)
    np.testing.assert_allclose(np.asarray(out_f32), np.asarray(ref),
                               rtol=1e-2, atol=1e-2)

    # 2) bf16-operand production path with bf16 writeback (f32 accumulation):
    #    check global relative error.
    out_bf16 = object_attention_block(x, proxy, params, key_channels,
                                      compute_dtype=jnp.bfloat16,
                                      out_dtype=jnp.bfloat16)
    out_bf16 = jax.block_until_ready(out_bf16)
    assert out_bf16.shape == (N, in_channels, H, W)
    assert out_bf16.dtype == jnp.bfloat16
    rel = (np.linalg.norm(np.asarray(out_bf16, dtype=np.float32) - np.asarray(ref))
           / max(np.linalg.norm(np.asarray(ref)), 1e-6))
    assert rel < 5e-2, f"bf16 relative error too large: {rel}"

    print("KERNEL_OK")
</pallas_src>

<mosaic_0001>
module attributes {stable_mosaic.version = 11 : i64} {
  func.func @_oab_kernel(%arg0: i32, %arg1: i32, %arg2: memref<1x8x128xf32, #tpu.memory_space<vmem>>, %arg3: memref<1x128x128xf32, #tpu.memory_space<vmem>>, %arg4: memref<1x128x128xf32, #tpu.memory_space<vmem>>, %arg5: memref<128x8xf32, #tpu.memory_space<vmem>>, %arg6: memref<128x1xf32, #tpu.memory_space<vmem>>, %arg7: memref<128x128xf32, #tpu.memory_space<vmem>>, %arg8: memref<128x1xf32, #tpu.memory_space<vmem>>, %arg9: memref<128x128xf32, #tpu.memory_space<vmem>>, %arg10: memref<128x1xf32, #tpu.memory_space<vmem>>, %arg11: memref<1x128x128xf32, #tpu.memory_space<vmem>>) attributes {dimension_semantics = [#tpu.dimension_semantics<parallel>, #tpu.dimension_semantics<parallel>], iteration_bounds = array<i64: 2, 2>, scalar_prefetch = 0 : i64, scratch_operands = 0 : i64, tpu.core_type = #tpu.core_type<tc>, window_params = [{transform_indices = @transform_0, window_bounds = array<i64: 1, 8, 128>}, {transform_indices = @transform_1, window_bounds = array<i64: 1, 128, 128>}, {transform_indices = @transform_2, window_bounds = array<i64: 1, 128, 128>}, {pipeline_mode = #tpu.pipeline_mode<synchronous>, transform_indices = @transform_3, window_bounds = array<i64: 128, 8>}, {pipeline_mode = #tpu.pipeline_mode<synchronous>, transform_indices = @transform_4, window_bounds = array<i64: 128, 1>}, {pipeline_mode = #tpu.pipeline_mode<synchronous>, transform_indices = @transform_5, window_bounds = array<i64: 128, 128>}, {pipeline_mode = #tpu.pipeline_mode<synchronous>, transform_indices = @transform_6, window_bounds = array<i64: 128, 1>}, {pipeline_mode = #tpu.pipeline_mode<synchronous>, transform_indices = @transform_7, window_bounds = array<i64: 128, 128>}, {pipeline_mode = #tpu.pipeline_mode<synchronous>, transform_indices = @transform_8, window_bounds = array<i64: 128, 1>}, {transform_indices = @transform_9, window_bounds = array<i64: 1, 128, 128>}]} {
    %c0 = arith.constant 0 : index
    %c0_0 = arith.constant 0 : index
    %c0_1 = arith.constant 0 : index
    %0 = vector.load %arg2[%c0, %c0_0, %c0_1] : memref<1x8x128xf32, #tpu.memory_space<vmem>>, vector<1x8x128xf32>
    %1 = vector.shape_cast %0 : vector<1x8x128xf32> to vector<8x128xf32>
    %c0_2 = arith.constant 0 : index
    %c0_3 = arith.constant 0 : index
    %2 = vector.load %arg5[%c0_2, %c0_3] : memref<128x8xf32, #tpu.memory_space<vmem>>, vector<128x8xf32>
    %cst = arith.constant dense<0.000000e+00> : vector<128x128xf32>
    %3 = tpu.matmul %2, %1, %cst {dimension_numbers = #tpu.dot_dimension_numbers<[1], [0], [0], [1], [0, 0, 1, 1], [], []>} : vector<128x8xf32>, vector<8x128xf32>, vector<128x128xf32> -> vector<128x128xf32>
    %c0_4 = arith.constant 0 : index
    %c0_5 = arith.constant 0 : index
    %4 = vector.load %arg6[%c0_4, %c0_5] : memref<128x1xf32, #tpu.memory_space<vmem>>, vector<128x1xf32>
    %5 = vector.broadcast %4 : vector<128x1xf32> to vector<128x128xf32>
    %6 = arith.addf %3, %5 : vector<128x128xf32>
    %cst_6 = arith.constant 0.000000e+00 : f32
    %7 = vector.broadcast %cst_6 : f32 to vector<128x128xf32>
    %8 = arith.maximumf %6, %7 : vector<128x128xf32>
    %c0_7 = arith.constant 0 : index
    %c0_8 = arith.constant 0 : index
    %9 = vector.load %arg7[%c0_7, %c0_8] : memref<128x128xf32, #tpu.memory_space<vmem>>, vector<128x128xf32>
    %cst_9 = arith.constant dense<0.000000e+00> : vector<128x128xf32>
    %10 = tpu.matmul %9, %8, %cst_9 {dimension_numbers = #tpu.dot_dimension_numbers<[1], [0], [0], [1], [0, 0, 1, 1], [], []>} : vector<128x128xf32>, vector<128x128xf32>, vector<128x128xf32> -> vector<128x128xf32>
    %c0_10 = arith.constant 0 : index
    %c0_11 = arith.constant 0 : index
    %11 = vector.load %arg8[%c0_10, %c0_11] : memref<128x1xf32, #tpu.memory_space<vmem>>, vector<128x1xf32>
    %12 = vector.broadcast %11 : vector<128x1xf32> to vector<128x128xf32>
    %13 = arith.addf %10, %12 : vector<128x128xf32>
    %cst_12 = arith.constant 0.000000e+00 : f32
    %14 = vector.broadcast %cst_12 : f32 to vector<128x128xf32>
    %15 = arith.maximumf %13, %14 : vector<128x128xf32>
    %c0_13 = arith.constant 0 : index
    %c0_14 = arith.constant 0 : index
    %c0_15 = arith.constant 0 : index
    %16 = vector.load %arg3[%c0_13, %c0_14, %c0_15] : memref<1x128x128xf32, #tpu.memory_space<vmem>>, vector<1x128x128xf32>
    %17 = vector.shape_cast %16 : vector<1x128x128xf32> to vector<128x128xf32>
    %cst_16 = arith.constant dense<0.000000e+00> : vector<128x128xf32>
    %18 = tpu.matmul %17, %15, %cst_16 {dimension_numbers = #tpu.dot_dimension_numbers<[1], [0], [0], [1], [0, 0, 1, 1], [], []>} : vector<128x128xf32>, vector<128x128xf32>, vector<128x128xf32> -> vector<128x128xf32>
    %19 = tpu.iota {dimensions = array<i32: 0>} : vector<128x128xi32>
    %c8_i32 = arith.constant 8 : i32
    %20 = vector.broadcast %c8_i32 : i32 to vector<128x128xi32>
    %21 = arith.cmpi slt, %19, %20 : vector<128x128xi32>
    %cst_17 = arith.constant 0xFF800000 : f32
    %22 = vector.broadcast %cst_17 : f32 to vector<128x128xf32>
    %23 = arith.select %21, %18, %22 : vector<128x128xi1>, vector<128x128xf32>
    %cst_18 = arith.constant dense<0xFF800000> : vector<128xf32>
    %24 = vector.multi_reduction <maximumf>, %23, %cst_18 [0] : vector<128x128xf32> to vector<128xf32>
    %25 = vector.shape_cast %24 : vector<128xf32> to vector<1x128xf32>
    %26 = vector.broadcast %25 : vector<1x128xf32> to vector<128x128xf32>
    %27 = arith.subf %23, %26 : vector<128x128xf32>
    %28 = math.exp %27 : vector<128x128xf32>
    %cst_19 = arith.constant dense<0.000000e+00> : vector<128xf32>
    %29 = vector.multi_reduction <add>, %28, %cst_19 [0] : vector<128x128xf32> to vector<128xf32>
    %30 = vector.shape_cast %29 : vector<128xf32> to vector<1x128xf32>
    %31 = tpu.reciprocal %30 {approx = true} : vector<1x128xf32> -> vector<1x128xf32>
    %32 = vector.broadcast %31 : vector<1x128xf32> to vector<128x128xf32>
    %33 = arith.mulf %28, %32 : vector<128x128xf32>
    %c0_20 = arith.constant 0 : index
    %c0_21 = arith.constant 0 : index
    %c0_22 = arith.constant 0 : index
    %34 = vector.load %arg4[%c0_20, %c0_21, %c0_22] : memref<1x128x128xf32, #tpu.memory_space<vmem>>, vector<1x128x128xf32>
    %35 = vector.shape_cast %34 : vector<1x128x128xf32> to vector<128x128xf32>
    %cst_23 = arith.constant dense<0.000000e+00> : vector<128x128xf32>
    %36 = tpu.matmul %35, %33, %cst_23 {dimension_numbers = #tpu.dot_dimension_numbers<[1], [0], [0], [1], [0, 0, 1, 1], [], []>} : vector<128x128xf32>, vector<128x128xf32>, vector<128x128xf32> -> vector<128x128xf32>
    %c0_24 = arith.constant 0 : index
    %c0_25 = arith.constant 0 : index
    %37 = vector.load %arg9[%c0_24, %c0_25] : memref<128x128xf32, #tpu.memory_space<vmem>>, vector<128x128xf32>
    %cst_26 = arith.constant dense<0.000000e+00> : vector<128x128xf32>
    %38 = tpu.matmul %37, %36, %cst_26 {dimension_numbers = #tpu.dot_dimension_numbers<[1], [0], [0], [1], [0, 0, 1, 1], [], []>} : vector<128x128xf32>, vector<128x128xf32>, vector<128x128xf32> -> vector<128x128xf32>
    %c0_27 = arith.constant 0 : index
    %c0_28 = arith.constant 0 : index
    %39 = vector.load %arg10[%c0_27, %c0_28] : memref<128x1xf32, #tpu.memory_space<vmem>>, vector<128x1xf32>
    %40 = vector.broadcast %39 : vector<128x1xf32> to vector<128x128xf32>
    %41 = arith.addf %38, %40 : vector<128x128xf32>
    %cst_29 = arith.constant 0.000000e+00 : f32
    %42 = vector.broadcast %cst_29 : f32 to vector<128x128xf32>
    %43 = arith.maximumf %41, %42 : vector<128x128xf32>
    %c0_30 = arith.constant 0 : index
    %c0_31 = arith.constant 0 : index
    %c0_32 = arith.constant 0 : index
    %44 = vector.load %arg11[%c0_30, %c0_31, %c0_32] : memref<1x128x128xf32, #tpu.memory_space<vmem>>, vector<1x128x128xf32>
    %45 = vector.shape_cast %44 : vector<1x128x128xf32> to vector<128x128xf32>
    %46 = vector.shape_cast %43 : vector<128x128xf32> to vector<1x128x128xf32>
    tpu.vector_store %arg11[%c0_30, %c0_31, %c0_32], %46 {strides = array<i32>} : memref<1x128x128xf32, #tpu.memory_space<vmem>>, vector<1x128x128xf32>,
    return
  }
  func.func @transform_0(%arg0: i32, %arg1: i32) -> (i32, i32, i32) {
    %c0_i32 = arith.constant 0 : i32
    %c0_i32_0 = arith.constant 0 : i32
    return %arg0, %c0_i32, %arg1 : i32, i32, i32
  }
  func.func @transform_1(%arg0: i32, %arg1: i32) -> (i32, i32, i32) {
    %c0_i32 = arith.constant 0 : i32
    %c0_i32_0 = arith.constant 0 : i32
    %c0_i32_1 = arith.constant 0 : i32
    return %arg0, %c0_i32, %c0_i32_0 : i32, i32, i32
  }
  func.func @transform_2(%arg0: i32, %arg1: i32) -> (i32, i32, i32) {
    %c0_i32 = arith.constant 0 : i32
    %c0_i32_0 = arith.constant 0 : i32
    %c0_i32_1 = arith.constant 0 : i32
    return %arg0, %c0_i32, %c0_i32_0 : i32, i32, i32
  }
  func.func @transform_3(%arg0: i32, %arg1: i32) -> (i32, i32) {
    %c0_i32 = arith.constant 0 : i32
    %c0_i32_0 = arith.constant 0 : i32
    %c0_i32_1 = arith.constant 0 : i32
    return %c0_i32, %c0_i32_0 : i32, i32
  }
  func.func @transform_4(%arg0: i32, %arg1: i32) -> (i32, i32) {
    %c0_i32 = arith.constant 0 : i32
    %c0_i32_0 = arith.constant 0 : i32
    %c0_i32_1 = arith.constant 0 : i32
    return %c0_i32, %c0_i32_0 : i32, i32
  }
  func.func @transform_5(%arg0: i32, %arg1: i32) -> (i32, i32) {
    %c0_i32 = arith.constant 0 : i32
    %c0_i32_0 = arith.constant 0 : i32
    %c0_i32_1 = arith.constant 0 : i32
    return %c0_i32, %c0_i32_0 : i32, i32
  }
  func.func @transform_6(%arg0: i32, %arg1: i32) -> (i32, i32) {
    %c0_i32 = arith.constant 0 : i32
    %c0_i32_0 = arith.constant 0 : i32
    %c0_i32_1 = arith.constant 0 : i32
    return %c0_i32, %c0_i32_0 : i32, i32
  }
  func.func @transform_7(%arg0: i32, %arg1: i32) -> (i32, i32) {
    %c0_i32 = arith.constant 0 : i32
    %c0_i32_0 = arith.constant 0 : i32
    %c0_i32_1 = arith.constant 0 : i32
    return %c0_i32, %c0_i32_0 : i32, i32
  }
  func.func @transform_8(%arg0: i32, %arg1: i32) -> (i32, i32) {
    %c0_i32 = arith.constant 0 : i32
    %c0_i32_0 = arith.constant 0 : i32
    %c0_i32_1 = arith.constant 0 : i32
    return %c0_i32, %c0_i32_0 : i32, i32
  }
  func.func @transform_9(%arg0: i32, %arg1: i32) -> (i32, i32, i32) {
    %c0_i32 = arith.constant 0 : i32
    %c0_i32_0 = arith.constant 0 : i32
    return %arg0, %c0_i32, %arg1 : i32, i32, i32
  }
}

</mosaic_0001>

<bundles_post_ra>
// kernel: tpu_custom_call.1
= control target key start
LH: loop header
LB: loop body
LE: loop exit
PB: predicated region body
PF: predicated region fallthrough
CT: control target
= control target key end

     0   :  { %s3421_s0 = inlined_call_operand.hbm [shape: f32[2,8,256], index: 0, kind: input, shape index: {}]   ;;  %s3422_s1 = inlined_call_operand.vmem [shape: f32[2,128,128], index: 1, kind: input, shape index: {}]   ;;  %s3423_s2 = inlined_call_operand.vmem [shape: f32[2,128,128], index: 2, kind: input, shape index: {}]   ;;  %s3424_s3 = inlined_call_operand.vmem [shape: f32[128,8], index: 3, kind: input, shape index: {}]   ;;  %s3425_s4 = inlined_call_operand.vmem [shape: f32[128,1], index: 4, kind: input, shape index: {}]   ;;  %s3426_s5 = inlined_call_operand.hbm [shape: f32[128,128], index: 5, kind: input, shape index: {}]   ;;  %s3427_s6 = inlined_call_operand.vmem [shape: f32[128,1], index: 6, kind: input, shape index: {}]   ;;  %s3428_s7 = inlined_call_operand.hbm [shape: f32[128,128], index: 7, kind: input, shape index: {}]   ;;  %s3429_s8 = inlined_call_operand.vmem [shape: f32[128,1], index: 8, kind: input, shape index: {}]   ;;  %s3430_s9 = inlined_call_operand.hbm [shape: f32[2,128,256], index: 9, kind: output, shape index: {}]  }
   0x1   :  { %3442 = sst [smem:[#allocation17_spill]] %s3422_s1 }
   0x2   :  { %3443 = sst [smem:[#allocation18_spill]] %s3423_s2 }
   0x3   :  { %3444 = sst [smem:[#allocation19_spill]] %s3426_s5 }
   0x4   :  { %3445 = sst [smem:[#allocation20_spill]] %s3428_s7 }
   0x5   :  { %3446 = sst [smem:[#allocation21_spill]] %s3430_s9 }
   0x6   :  { %14 = vsyncpa [#allocation3], 0 }
   0x7   :  { %16 = vsyncpa [#allocation3 + $0x1], 0 }
   0x8   :  { %17 = vsyncpa [#allocation6], 0 }
   0x9   :  { %18 = vsyncpa [#allocation4], 0 }
   0xa   :  { %20 = vsyncpa [#allocation4 + $0x1], 0  ;;  %s2871_s30 = smov 0   ;;  %s2873_s10 = smov 0  }
   0xb   :  { %s2875_s11 = smov 0   ;;  %s2877_s12 = smov 0  }
   0xc   :  { %s2879_s13 = smov 0   ;;  %s2881_s14 = smov 0  }
   0xd   :  { %s2883_s15 = smov 0   ;;  %s2885_s16 = smov 0  }
   0xe LB: > { %3447 = sst [smem:[#allocation12_spill]] %s2781_s30  ;;  %s3431_s17 = sadd.s32 4294967295, %s2809_s16   ;;  %s2809_s16 = sphi %s2885_s16, %s26_s16   ;;  %s2805_s15 = sphi %s2883_s15, %s3481_s15   ;;  %s2801_s14 = sphi %s2881_s14, %s3480_s14   ;;  %s2797_s13 = sphi %s2879_s13, %s3479_s13   ;;  %s2793_s12 = sphi %s2877_s12, %s3478_s12   ;;  %s2789_s11 = sphi %s2875_s11, %s3477_s11   ;;  %s2785_s10 = sphi %s2873_s10, %s3476_s10   ;;  %s2781_s30 = sphi %s2871_s30, %s3475_s30  }
   0xf   : > { %3448 = sst [smem:[#allocation13_spill]] %s2793_s12  ;;  %s1945_s18 = sadd.s32 4294967294, %s2809_s16  }
  0x10   : > { %p60_p0 = scmp.ne.s32.totalorder %s2785_s10, %s2781_s30  ;;  %p2917_p1 = scmp.eq.s32.totalorder %s3431_s17, 0 }
  0x11   : > { %p270_p2 = scmp.eq.s32.totalorder %s1945_s18, 3  ;;  %p1946_p4 = scmp.ge.s32.totalorder %s2809_s16, 1 }
  0x12   : > { %s3449_s19 = scalar_select %p2917_p1, 1, 0 }
  0x13   : > { %p2923_p3 = por %p2917_p1, %p60_p0  ;;  %p2928_p5 = por %p270_p2, %p60_p0 }
  0x14   : > { %p277_p6 = scmp.lt.s32.totalorder %s2809_s16, 5  ;;  %s2811_s23 = smov [#allocation5]  }
  0x15   : > { %s3450_s20 = scalar_select %p2923_p3, 1, 0 }
  0x16   : > { %s3451_s21 = scalar_select %p2928_p5, 1, 0 }
  0x17   : > { %p2933_p7 = pnand %p1946_p4, %p277_p6  ;;  %s295_s24 = sshll.u32 %s2811_s23, 4  ;;  %s296_s24 = int_to_ptr.vmem [resolvable:$true] %s295_s24 }
  0x18   : > { %3452 = sst [smem:[#allocation14_spill]] %s3451_s21  ;;  %s2812_s26 = smov [#allocation7]  }
  0x19   : > { %s3453_s22 = scalar_select %p2933_p7, 1, 0 }
  0x1a   : > { %p2520_p8 = pneg %p2933_p7  ;;  %s311_s27 = sshll.u32 %s2812_s26, 4  ;;  %s2945_s27 = int_to_ptr.vmem [resolvable:$true] %s311_s27 }
  0x1b   : > { %s3455_s5 = sld [smem:[#allocation19_spill]] }
  0x1c   : > { %p2941_p9 = pnand %p2520_p8, %p2917_p1 }
  0x1e   : > { %p2623_p11 = pneg %p2941_p9 }
  0x21   : > { %s2621_s18 = scalar_lea.hbm %s3455_s5, 2048 }
  0x22   : > { %p2622_p10 = scmp.ne.s32.totalorder %s3455_s5, %s2621_s18  ;;  %p2628_p0 = scmp.lt.u32.totalorder %s2621_s18, %s3455_s5 }
  0x24   : > { %p2624_p12 = pnand %p2623_p11, %p2622_p10 }
  0x26   : > { %p2625_p13 = pneg %p2624_p12 }
  0x28   : > { %p2630_p2 = pnand %p2628_p0, %p2625_p13 }
  0x2a   : > { %2633 = shalt.err (!%p2630_p2)
}
  0x2b   : > { %s2634_s26 = scalar_lea.vmem %s296_s24, 2048  ;;  %p2642_p5 = scmp.lt.s32.totalorder %s296_s24, %s296_s24 }
  0x2c   : > { %p2635_p4 = scmp.ne.s32.totalorder %s296_s24, %s2634_s26  ;;  %p2643_p1 = scmp.lt.s32.totalorder %s2634_s26, %s2634_s26 }
  0x2e   : > { %p2637_p6 = pnand %p2635_p4, %p2623_p11  ;;  %p2644_p3 = por %p2643_p1, %p2642_p5 }
  0x30   : > { %p2638_p8 = pneg %p2637_p6 }
  0x32   : > { %p2645_p7 = pnand %p2644_p3, %p2638_p8 }
  0x34   : > { %2648 = shalt.err (!%p2645_p7)
}
  0x35   : > { %s2813_s17 = smov 128   ;;  %s2814_s28 = smov 8  }
  0x36   : > { %2523 = dma.hbm_to_vmem [thread:$0]  (!%p2941_p9), %s3455_s5, 2048, %s296_s24, [#allocation6], %s2813_s17, %s2813_s17, %s2814_s28  }
  0x37   : > { %s3456_s7 = sld [smem:[#allocation20_spill]] }
  0x3d   : > { %s2649_s23 = scalar_lea.hbm %s3456_s7, 2048 }
  0x3e   : > { %p2650_p10 = scmp.ne.s32.totalorder %s3456_s7, %s2649_s23  ;;  %p2656_p5 = scmp.lt.u32.totalorder %s2649_s23, %s3456_s7 }
  0x40   : > { %p2652_p1 = pnand %p2650_p10, %p2623_p11 }
  0x42   : > { %p2653_p3 = pneg %p2652_p1 }
  0x44   : > { %p2658_p7 = pnand %p2656_p5, %p2653_p3 }
  0x46   : > { %2661 = shalt.err (!%p2658_p7)
}
  0x47   : > { %s2662_s24 = scalar_lea.vmem %s2945_s27, 2048  ;;  %p2670_p2 = scmp.lt.s32.totalorder %s2945_s27, %s2945_s27 }
  0x48   : > { %p2663_p12 = scmp.ne.s32.totalorder %s2945_s27, %s2662_s24  ;;  %p2671_p4 = scmp.lt.s32.totalorder %s2662_s24, %s2662_s24 }
  0x4a   : > { %p2665_p13 = pnand %p2663_p12, %p2623_p11  ;;  %p2672_p6 = por %p2671_p4, %p2670_p2 }
  0x4c   : > { %p2666_p0 = pneg %p2665_p13 }
  0x4e   : > { %p2673_p8 = pnand %p2672_p6, %p2666_p0 }
  0x50   : > { %2676 = shalt.err (!%p2673_p8)
}
  0x51   : > { %2526 = dma.hbm_to_vmem [thread:$0]  (!%p2941_p9), %s3456_s7, 2048, %s2945_s27, [#allocation6], %s2813_s17, %s2813_s17, %s2814_s28  }
  0x52   : > { %s3457_s12 = sadd.s32 4294967295, %s2809_s16   ;;  %s35_s30 = sadd.s32 1, %s2801_s14 }
  0x53   : > { %p264_p11 = scmp.eq.s32.totalorder %s3457_s12, 3  ;;  %p36_p10 = scmp.ge.s32.totalorder %s35_s30, 2 }
  0x54   : > { %s38_s25 = sadd.s32 1, %s2805_s15  ;;  %p54_p1 = scmp.ne.s32.totalorder %s2789_s11, %s2785_s10 }
  0x55   : > { %p55_p3 = scmp.eq.s32.totalorder %s2809_s16, 0  ;;  %s3483_s30 = smov (%p36_p10, %s35_s30), 0 }
  0x56   : > { %3458 = sst [smem:[#allocation15_spill]] %s3483_s30  ;;  %s3485_s25 = smov (!%p36_p10, %s38_s25), %s2805_s15 }
  0x57   : > { %s43_s21 = ssub.s32 %s2801_s14, %s3483_s30  ;;  %s47_s29 = sadd.s32 1, %s2789_s11 }
  0x58   : > { %p40_p5 = scmp.ge.s32.totalorder %s3485_s25, 2  ;;  %p3007_p9 = por %p264_p11, %p54_p1 }
  0x59   : > { %p3011_p7 = por %p55_p3, %p54_p1  ;;  %s328_s28 = sand.u32 1, %s2789_s11  }
  0x5a   : > { %s3459_s27 = scalar_select %p3007_p9, 1, 0 }
  0x5b   : > { %s3487_s25 = smov (%p40_p5, %s3485_s25), 0  ;;  %p2537_p12 = scmp.lt.s32.totalorder %s2809_s16, 4 }
  0x5c   : > { %3460 = sst [smem:[#allocation16_spill]] %s3459_s27  ;;  %s1950_s18 = sshll.u32 %s328_s28, 3 }
  0x5d   : > { %s42_s23 = ssub.s32 %s2805_s15, %s3487_s25  ;;  %s1951_s24 = sshll.u32 %s2805_s15, 1 }
  0x5e   : > { %s44_s26 = sor.u32 %s43_s21, %s42_s23  ;;  %s337_s2 = sadd.s32 %s2801_s14, %s1951_s24 }
  0x5f   : > { %p45_p13 = scmp.eq.s32.totalorder %s44_s26, 0  ;;  %s1952_s9 = sshll.u32 %s337_s2, 7 }
  0x60   : > { %s332_s12 = scalar_lea.vmem [#allocation2], %s1950_s18  ;;  %s3029_s1 = scalar_lea.hbm %s3421_s0, %s1952_s9 }
  0x61   : > { %s341_s5 = sshll.u32 %s332_s12, 4  ;;  %p3037_p0 = pnand %p2537_p12, %p3011_p7  ;;  %s3031_s5 = int_to_ptr.vmem [resolvable:$true] %s341_s5 }
  0x62   : > { %s3024_s7 = scalar_select %p45_p13, %s2789_s11, %s47_s29  }
  0x63   : > { %s329_s29 = scalar_lea.sflag [#allocation3], %s328_s28  ;;  %s2677_s18 = scalar_lea.hbm %s3029_s1, 128 }
  0x64   : > { %p2678_p2 = scmp.ne.s32.totalorder %s3029_s1, %s2677_s18  ;;  %p2679_p4 = pneg %p3037_p0 }
  0x65   : > { %s2682_s17 = scalar_lea.hbm %s3421_s0, 512  ;;  %p2683_p11 = scmp.lt.u32.totalorder %s3029_s1, %s3421_s0 }
  0x66   : > { %p2680_p6 = pnand %p2679_p4, %p2678_p2  ;;  %p2684_p10 = scmp.lt.u32.totalorder %s2682_s17, %s2677_s18 }
  0x67   : > { %p2686_p3 = scmp.lt.u32.totalorder %s2677_s18, %s3029_s1 }
  0x68   : > { %p2681_p8 = pneg %p2680_p6  ;;  %p2685_p1 = por %p2684_p10, %p2683_p11 }
  0x6a   : > { %p2687_p5 = por %p2686_p3, %p2685_p1 }
  0x6c   : > { %p2688_p7 = pnand %p2687_p5, %p2681_p8 }
  0x6e   : > { %2691 = shalt.err (!%p2688_p7)
}
  0x6f   : > { %s2692_s28 = scalar_lea.vmem %s3031_s5, 128  ;;  %s2815_s24 = smov [#allocation2]  }
  0x70   : > { %p2693_p12 = scmp.ne.s32.totalorder %s3031_s5, %s2692_s28  ;;  %s2697_s2 = sshll.u32 %s2815_s24, 4  ;;  %s2698_s2 = int_to_ptr.vmem [resolvable:$false] %s2697_s2 }
  0x71   : > { %s2699_s9 = scalar_lea.vmem %s2698_s2, 256  ;;  %p2700_p6 = scmp.lt.s32.totalorder %s3031_s5, %s2698_s2 }
  0x72   : > { %p2695_p13 = pnand %p2693_p12, %p2679_p4  ;;  %p2701_p11 = scmp.lt.s32.totalorder %s2699_s9, %s2692_s28 }
  0x74   : > { %p2696_p2 = pneg %p2695_p13  ;;  %p2702_p10 = por %p2701_p11, %p2700_p6 }
  0x76   : > { %p2703_p1 = pnand %p2702_p10, %p2696_p2 }
  0x78   : > { %2706 = shalt.err (!%p2703_p1)
}
  0x79   : > { %2530 = dma.hbm_to_vmem [thread:$0]  (!%p3037_p0), %s3029_s1, 128, %s3031_s5, %s329_s29  }
  0x7a   : > { %p3463_p8 = scmp.ne.s32.totalorder %s3453_s22, 0 }
  0x7b   : > { %s3069_s12 = sand.u32 (!%p3463_p8), 1, %s2785_s10   ;;  %p3464_p4 = scmp.ne.s32.totalorder (!%p3463_p8), %s3450_s20, 0 }
  0x7c   : > { %366 = sbr.rel (%p3463_p8) target bundleno = 1480 (0x5c8), region = 56  ;;  %s1954_s18 = sshll.u32 (!%p3463_p8), %s3069_s12, 3 }
  0x7d   : > { %s369_s30 = scalar_lea.sflag (!%p3463_p8), [#allocation3], %s3069_s12  ;;  %s372_s27 = scalar_lea.vmem (!%p3463_p8), [#allocation2], %s1954_s18 }
  0x83   : > { %2768 = dma.done.wait (%p3464_p4), %s369_s30, 128  }
  0x84   : > { %2770 = vsyncadd (%p3464_p4), %s369_s30, 4294967168  ;;  %p3465_p3 = scmp.ne.s32.totalorder %s3449_s19, 0 }
  0x86   : > { %2772 = dma.done.wait (%p3465_p3), [#allocation6], 4096  }
  0x87   : > { %2774 = vsyncadd (%p3465_p3), [#allocation6], 4294963200  ;;  %v2816_v0 = vmov 0   ;;  %vm548_vm0 = vcmask 64512   ;;  %v454_v1 = vld [vmem:[%s3425_s4 + $0x10] sm:$0xff]  ;;  %v452_v2 = vld [vmem:[%s3425_s4] sm:$0xff] }
  0x88   : > { %2614 = vset.pattern.permute.xlu1 %v2816_v0  ;;  %2613 = vset.pattern.permute.xlu0 %v2816_v0  ;;  %v435_v3 = vld [vmem:[%s372_s27] sm:$0xff]  ;;  %v455_v6 = vld [vmem:[%s3425_s4 + $0x18] sm:$0xff]  ;;  %v438_v8 = vld [vmem:[%s3424_s3 + $0x10] sm:$0xff]  ;;  %p425_p0 = scmp.lt.s32.totalorder %s2797_s13, 1  ;;  %s3466_s9 = sld [smem:[#allocation17_spill]] }
  0x89   : > { %480 = vperm.xlu1 %2614, %v454_v1   ;;  %470 = vperm.xlu0 %2613, %v452_v2   ;;  %v436_v4 = vld [vmem:[%s3424_s3] sm:$0xff]  ;;  %v437_v5 = vld [vmem:[%s3424_s3 + $0x8] sm:$0xff]  ;;  %v439_v9 = vld [vmem:[%s3424_s3 + $0x18] sm:$0xff]  ;;  %s3467_s1 = sld [smem:[#allocation18_spill]]  ;;  %s1957_s22 = sshll.u32 %s3069_s12, 7 }
  0x8a   : > { %2130 = vmatprep.subr.mxu0 %v435_v3  ;;  %2132 = vmatprep.mubr.msk.f32.mxu0 %vm548_vm0, %v436_v4  ;;  %v453_v7 = vld [vmem:[%s3425_s4 + $0x8] sm:$0xff]  ;;  %v456_v11 = vld [vmem:[%s3425_s4 + $0x20] sm:$0xff]  ;;  %v459_v14 = vld [vmem:[%s3425_s4 + $0x38] sm:$0xff]  ;;  %s3291_s26 = scalar_select %p425_p0, %s2797_s13, 1 }
  0x8b   : > { %2131 = vmatpush3.msra.mxu0 %v435_v3  ;;  %v457_v10 = vld [vmem:[%s3425_s4 + $0x28] sm:$0xff]  ;;  %v440_v12 = vld [vmem:[%s3424_s3 + $0x20] sm:$0xff]  ;;  %v458_v15 = vld [vmem:[%s3425_s4 + $0x30] sm:$0xff]  ;;  %s3341_s21 = scalar_lea.vmem [#allocation8], %s1957_s22  ;;  %s3468_s20 = sld [smem:[#allocation13_spill]] }
  0x8c   : > { %2133 = vmatmul.mubr.msk.f32.vlgmr.msra.gmra.mrb[0].mxu0 %vm548_vm0, %v437_v5  ;;  %v441_v13 = vld [vmem:[%s3424_s3 + $0x28] sm:$0xff]  ;;  %v442_v16 = vld [vmem:[%s3424_s3 + $0x30] sm:$0xff]  ;;  %v443_v17 = vld [vmem:[%s3424_s3 + $0x38] sm:$0xff]  ;;  %s1983_s28 = sshll.u32 %s3291_s26, 7  ;;  %s1979_s29 = sshll.u32 %s2797_s13, 5 }
  0x8d   : > { %485 = vperm.xlu1 %2614, %v455_v6   ;;  %475 = vperm.xlu0 %2613, %v453_v7   ;;  %v461_v18 = vld [vmem:[%s3425_s4 + $0x48] sm:$0xff]  ;;  %v460_v19 = vld [vmem:[%s3425_s4 + $0x40] sm:$0xff]  ;;  %v463_v22 = vld [vmem:[%s3425_s4 + $0x58] sm:$0xff]  ;;  %s1813_s13 = sshll.u32 %s3341_s21, 4  ;;  %s3470_s24 = sld [smem:[#allocation21_spill]]  ;;  %s3365_s13 = int_to_ptr.vmem [resolvable:$true] %s1813_s13 }
  0x8e   : > { %2135 = vmatprep.mubr.msk.f32.mxu0 %vm548_vm0, %v438_v8  ;;  %v444_v20 = vld [vmem:[%s3424_s3 + $0x40] sm:$0xff]  ;;  %v445_v21 = vld [vmem:[%s3424_s3 + $0x48] sm:$0xff]  ;;  %v462_v23 = vld [vmem:[%s3425_s4 + $0x50] sm:$0xff]  ;;  %s3299_s18 = scalar_lea.vmem %s3466_s9, %s1983_s28  ;;  %s1799_s9 = scalar_lea.sflag [#allocation4], %s3069_s12 }
  0x8f   : > { %v446_v24 = vld [vmem:[%s3424_s3 + $0x50] sm:$0xff]  ;;  %v447_v25 = vld [vmem:[%s3424_s3 + $0x58] sm:$0xff]  ;;  %v465_v26 = vld [vmem:[%s3425_s4 + $0x68] sm:$0xff]  ;;  %s3308_s5 = scalar_lea.vmem %s3467_s1, %s1983_s28  ;;  %s2817_s30 = smov [#allocation8]  }
  0x90   : > { %2136 = vmatmul.mubr.msk.f32.gmra.mrb[2].mxu0 %vm548_vm0, %v439_v9  ;;  %v464_v27 = vld [vmem:[%s3425_s4 + $0x60] sm:$0xff]  ;;  %v449_v29 = vld [vmem:[%s3424_s3 + $0x68] sm:$0xff]  ;;  %v467_v30 = vld [vmem:[%s3425_s4 + $0x78] sm:$0xff]  ;;  %s2711_s27 = sshll.u32 %s2817_s30, 4  ;;  %s2712_s27 = int_to_ptr.vmem [resolvable:$false] %s2711_s27 }
  0x91   : > { %495 = vperm.xlu1 %2614, %v457_v10   ;;  %490 = vperm.xlu0 %2613, %v456_v11   ;;  %v448_v28 = vld [vmem:[%s3424_s3 + $0x60] sm:$0xff]  ;;  %v466_v31 = vld [vmem:[%s3425_s4 + $0x70] sm:$0xff]  ;;  %v451_v33 = vld [vmem:[%s3424_s3 + $0x78] sm:$0xff]  ;;  %s1810_s19 = sadd.s32 %s3468_s20, %s1979_s29  ;;  %s2713_s1 = scalar_lea.vmem %s2712_s27, 4096 }
  0x92   : > { %2138 = vmatprep.mubr.msk.f32.mxu0 %vm548_vm0, %v440_v12  ;;  %v450_v32 = vld [vmem:[%s3424_s3 + $0x70] sm:$0xff]  ;;  %v775_v34 = vld [vmem:[%s3427_s6 + $0x8] sm:$0xff]  ;;  %v774_v35 = vld [vmem:[%s3427_s6] sm:$0xff]  ;;  %s1980_s17 = sshll.u32 %s1810_s19, 7  ;;  %p2714_p13 = scmp.lt.s32.totalorder %s3365_s13, %s2712_s27 }
  0x93   : > { %v777_v36 = vld [vmem:[%s3427_s6 + $0x18] sm:$0xff]  ;;  %v776_v37 = vld [vmem:[%s3427_s6 + $0x10] sm:$0xff]  ;;  %v779_v38 = vld [vmem:[%s3427_s6 + $0x28] sm:$0xff]  ;;  %s3363_s2 = scalar_lea.hbm %s3470_s24, %s1980_s17 }
  0x94   : > { %2139 = vmatmul.mubr.msk.f32.gmra.mrb[4].mxu0 %vm548_vm0, %v441_v13  ;;  %v778_v39 = vld [vmem:[%s3427_s6 + $0x20] sm:$0xff]  ;;  %v781_v40 = vld [vmem:[%s3427_s6 + $0x38] sm:$0xff]  ;;  %v780_v41 = vld [vmem:[%s3427_s6 + $0x30] sm:$0xff] }
  0x95   : > { %505 = vperm.xlu1 %2614, %v459_v14   ;;  %500 = vperm.xlu0 %2613, %v458_v15   ;;  %v783_v42 = vld [vmem:[%s3427_s6 + $0x48] sm:$0xff]  ;;  %v782_v43 = vld [vmem:[%s3427_s6 + $0x40] sm:$0xff]  ;;  %v785_v44 = vld [vmem:[%s3427_s6 + $0x58] sm:$0xff] }
  0x96   : > { %2141 = vmatprep.mubr.msk.f32.mxu0 %vm548_vm0, %v442_v16  ;;  %v784_v45 = vld [vmem:[%s3427_s6 + $0x50] sm:$0xff]  ;;  %v787_v46 = vld [vmem:[%s3427_s6 + $0x68] sm:$0xff]  ;;  %v786_v47 = vld [vmem:[%s3427_s6 + $0x60] sm:$0xff] }
  0x97   : > { %v789_v48 = vld [vmem:[%s3427_s6 + $0x78] sm:$0xff]  ;;  %v788_v49 = vld [vmem:[%s3427_s6 + $0x70] sm:$0xff]  ;;  %v1526_v50 = vld [vmem:[%s3429_s8 + $0x8] sm:$0xff] }
  0x98   : > { %2142 = vmatmul.mubr.msk.f32.gmra.mrb[6].mxu0 %vm548_vm0, %v443_v17  ;;  %v1525_v51 = vld [vmem:[%s3429_s8] sm:$0xff]  ;;  %v1528_v52 = vld [vmem:[%s3429_s8 + $0x18] sm:$0xff]  ;;  %v1527_v53 = vld [vmem:[%s3429_s8 + $0x10] sm:$0xff] }
  0x99   : > { %515 = vperm.xlu1 %2614, %v461_v18   ;;  %510 = vperm.xlu0 %2613, %v460_v19   ;;  %v1530_v54 = vld [vmem:[%s3429_s8 + $0x28] sm:$0xff]  ;;  %v1529_v55 = vld [vmem:[%s3429_s8 + $0x20] sm:$0xff]  ;;  %v1532_v56 = vld [vmem:[%s3429_s8 + $0x38] sm:$0xff] }
  0x9a   : > { %2144 = vmatprep.mubr.msk.f32.mxu0 %vm548_vm0, %v444_v20  ;;  %v1531_v57 = vld [vmem:[%s3429_s8 + $0x30] sm:$0xff]  ;;  %v1534_v58 = vld [vmem:[%s3429_s8 + $0x48] sm:$0xff]  ;;  %v1533_v59 = vld [vmem:[%s3429_s8 + $0x40] sm:$0xff] }
  0x9b   : > { %v1536_v60 = vld [vmem:[%s3429_s8 + $0x58] sm:$0xff]  ;;  %v1535_v61 = vld [vmem:[%s3429_s8 + $0x50] sm:$0xff]  ;;  %v1538_v62 = vld [vmem:[%s3429_s8 + $0x68] sm:$0xff] }
  0x9c   : > { %2145 = vmatmul.mubr.msk.f32.gmra.mrb[8].mxu0 %vm548_vm0, %v445_v21  ;;  %v1537_v63 = vld [vmem:[%s3429_s8 + $0x60] sm:$0xff]  ;;  %v1540_v0 = vld [vmem:[%s3429_s8 + $0x78] sm:$0xff]  ;;  %v1539_v1 = vld [vmem:[%s3429_s8 + $0x70] sm:$0xff] }
  0x9d   : > { %525 = vperm.xlu1 %2614, %v463_v22   ;;  %520 = vperm.xlu0 %2613, %v462_v23   ;;  %v758_v2 = vld [vmem:[#allocation5] sm:$0xff] }
  0x9e   : > { %2147 = vmatprep.mubr.msk.f32.mxu0 %vm548_vm0, %v446_v24  ;;  %2188 = vmatprep.mubr.f32.mxu1 %v758_v2 }
  0xa0   : > { %2148 = vmatmul.mubr.msk.f32.gmra.mrb[10].mxu0 %vm548_vm0, %v447_v25 }
  0xa1   : > { %535 = vperm.xlu1 %2614, %v465_v26   ;;  %530 = vperm.xlu0 %2613, %v464_v27  }
  0xa2   : > { %2150 = vmatprep.mubr.msk.f32.mxu0 %vm548_vm0, %v448_v28 }
  0xa4   : > { %2151 = vmatmul.mubr.msk.f32.gmra.mrb[12].mxu0 %vm548_vm0, %v449_v29 }
  0xa5   : > { %545 = vperm.xlu1 %2614, %v467_v30   ;;  %540 = vperm.xlu0 %2613, %v466_v31  }
  0xa6   : > { %2153 = vmatprep.mubr.msk.f32.mxu0 %vm548_vm0, %v450_v32 }
  0xa8   : > { %2154 = vmatmul.mubr.msk.f32.gmra.mrb[14].mxu0 %vm548_vm0, %v451_v33 }
  0xa9   : > { %797 = vperm.xlu1 %2614, %v775_v34   ;;  %792 = vperm.xlu0 %2613, %v774_v35  }
  0xad   : > { %807 = vperm.xlu1 %2614, %v777_v36   ;;  %802 = vperm.xlu0 %2613, %v776_v37  }
  0xb1   : > { %817 = vperm.xlu1 %2614, %v779_v38   ;;  %812 = vperm.xlu0 %2613, %v778_v39  }
  0xb5   : > { %827 = vperm.xlu1 %2614, %v781_v40   ;;  %822 = vperm.xlu0 %2613, %v780_v41  }
  0xb9   : > { %837 = vperm.xlu1 %2614, %v783_v42   ;;  %832 = vperm.xlu0 %2613, %v782_v43  }
  0xbd   : > { %847 = vperm.xlu1 %2614, %v785_v44   ;;  %842 = vperm.xlu0 %2613, %v784_v45  }
  0xc1   : > { %857 = vperm.xlu1 %2614, %v787_v46   ;;  %852 = vperm.xlu0 %2613, %v786_v47  }
  0xc5   : > { %867 = vperm.xlu1 %2614, %v789_v48   ;;  %862 = vperm.xlu0 %2613, %v788_v49  }
  0xc9   : > { %1548 = vperm.xlu1 %2614, %v1526_v50   ;;  %1543 = vperm.xlu0 %2613, %v1525_v51  }
  0xcd   : > { %1558 = vperm.xlu1 %2614, %v1528_v52   ;;  %1553 = vperm.xlu0 %2613, %v1527_v53  }
  0xd1   : > { %1568 = vperm.xlu1 %2614, %v1530_v54   ;;  %1563 = vperm.xlu0 %2613, %v1529_v55  }
  0xd5   : > { %1578 = vperm.xlu1 %2614, %v1532_v56   ;;  %1573 = vperm.xlu0 %2613, %v1531_v57  }
  0xd9   : > { %1588 = vperm.xlu1 %2614, %v1534_v58   ;;  %1583 = vperm.xlu0 %2613, %v1533_v59  }
  0xdd   : > { %1598 = vperm.xlu1 %2614, %v1536_v60   ;;  %1593 = vperm.xlu0 %2613, %v1535_v61  }
  0xe1   : > { %1608 = vperm.xlu1 %2614, %v1538_v62   ;;  %1603 = vperm.xlu0 %2613, %v1537_v63  }
  0xe5   : > { %1618 = vperm.xlu1 %2614, %v1540_v0   ;;  %1613 = vperm.xlu0 %2613, %v1539_v1  }
 0x108   : > { %v481_v3 = vpop.permute.xlu1 %480  ;;  %v471_v4 = vpop.permute.xlu0 %470 }
 0x10c   : > { %v486_v5 = vpop.permute.xlu1 %485  ;;  %v476_v6 = vpop.permute.xlu0 %475 }
 0x110   : > { %v496_v7 = vpop.permute.xlu1 %495  ;;  %v491_v8 = vpop.permute.xlu0 %490 }
 0x114   : > { %v506_v14 = vpop.permute.xlu1 %505  ;;  %v501_v17 = vpop.permute.xlu0 %500 }
 0x118   : > { %v516_v27 = vpop.permute.xlu1 %515  ;;  %v511_v30 = vpop.permute.xlu0 %510 }
 0x11c   : > { %v526_v39 = vpop.permute.xlu1 %525  ;;  %v521_v42 = vpop.permute.xlu0 %520 }
 0x120   : > { %v536_v52 = vpop.permute.xlu1 %535  ;;  %v531_v55 = vpop.permute.xlu0 %530 }
 0x124   : > { %v546_v0 = vpop.permute.xlu1 %545 }
 0x15f   : > { %v2134_v9 = vpop.f32.mrb[0].mxu0 }
 0x160   : > { %v669_v10 = vadd.f32 %v2134_v9, %v476_v6  ;;  %v663_v11 = vpop.f32.mrb[1].mxu0 }
 0x161   : > { %v664_v12 = vadd.f32 %v663_v11, %v471_v4  ;;  %v759_v11 = vld [vmem:[#allocation5 + $0x8] sm:$0xff] }
 0x162   : > { %v743_v13 = vmax.f32 %v669_v10, 0.0 }
 0x163   : > { %v742_v15 = vmax.f32 %v664_v12, 0.0  ;;  %v2137_v16 = vpop.f32.mrb[2].mxu0  ;;  %v760_v12 = vld [vmem:[#allocation5 + $0x10] sm:$0xff] }
 0x164   : > { %v679_v18 = vadd.f32 %v2137_v16, %v486_v5  ;;  %v673_v19 = vpop.f32.mrb[3].mxu0  ;;  %v764_v16 = vld [vmem:[#allocation5 + $0x30] sm:$0xff] }
 0x165   : > { %v674_v20 = vadd.f32 %v673_v19, %v481_v3  ;;  %v2380_v21 = vpack.c.bf16 %v743_v13, %v742_v15  ;;  %v541_v3 = vpop.permute.xlu0 %540  ;;  %v761_v13 = vld [vmem:[#allocation5 + $0x18] sm:$0xff]  ;;  %v763_v15 = vld [vmem:[#allocation5 + $0x28] sm:$0xff] }
 0x166   : > { %v745_v22 = vmax.f32 %v679_v18, 0.0  ;;  %v766_v18 = vld [vmem:[#allocation5 + $0x40] sm:$0xff]  ;;  %v767_v19 = vld [vmem:[#allocation5 + $0x48] sm:$0xff] }
 0x167   : > { %v744_v23 = vmax.f32 %v674_v20, 0.0  ;;  %v2140_v24 = vpop.f32.mrb[4].mxu0  ;;  %2381 = vmatprep.subr.bf16.mxu1 %v2380_v21  ;;  %v768_v20 = vld [vmem:[#allocation5 + $0x50] sm:$0xff] }
 0x168   : > { %v689_v25 = vadd.f32 %v2140_v24, %v496_v7  ;;  %v683_v26 = vpop.f32.mrb[5].mxu0  ;;  %2383 = vmatpush3.bf16.msra.mxu1 %v2380_v21  ;;  %v769_v21 = vld [vmem:[#allocation5 + $0x58] sm:$0xff]  ;;  %v772_v24 = vld [vmem:[#allocation5 + $0x70] sm:$0xff] }
 0x169   : > { %v2384_v28 = vpack.c.bf16 %v745_v22, %v744_v23  ;;  %v684_v29 = vadd.f32 %v683_v26, %v491_v8  ;;  %v770_v22 = vld [vmem:[#allocation5 + $0x60] sm:$0xff]  ;;  %v771_v23 = vld [vmem:[#allocation5 + $0x68] sm:$0xff]  ;;  %v1031_v26 = vld [vmem:[%s3299_s18] sm:$0xff] }
 0x16a   : > { %v747_v31 = vmax.f32 %v689_v25, 0.0  ;;  %v773_v25 = vld [vmem:[#allocation5 + $0x78] sm:$0xff]  ;;  %2244 = vmatprep.mubr.f32.mxu0 %v1031_v26 }
 0x16b   : > { %v746_v32 = vmax.f32 %v684_v29, 0.0  ;;  %v2143_v33 = vpop.f32.mrb[6].mxu0  ;;  %2385 = vmatprep.subr.bf16.mxu1 %v2384_v28 }
 0x16c   : > { %v699_v34 = vadd.f32 %v2143_v33, %v506_v14  ;;  %v693_v35 = vpop.f32.mrb[7].mxu0  ;;  %2387 = vmatpush3.bf16.msra.mxu1 %v2384_v28  ;;  %v762_v14 = vld [vmem:[#allocation5 + $0x20] sm:$0xff]  ;;  %v793_v28 = vpop.permute.xlu0 %792 }
 0x16d   : > { %v2388_v36 = vpack.c.bf16 %v747_v31, %v746_v32  ;;  %v694_v37 = vadd.f32 %v693_v35, %v501_v17  ;;  %v765_v17 = vld [vmem:[#allocation5 + $0x38] sm:$0xff] }
 0x16e   : > { %v749_v38 = vmax.f32 %v699_v34, 0.0 }
 0x16f   : > { %v748_v40 = vmax.f32 %v694_v37, 0.0  ;;  %v2146_v41 = vpop.f32.mrb[8].mxu0  ;;  %2389 = vmatprep.subr.bf16.mxu1 %v2388_v36 }
 0x170   : > { %v709_v43 = vadd.f32 %v2146_v41, %v516_v27  ;;  %v703_v44 = vpop.f32.mrb[9].mxu0  ;;  %2391 = vmatpush3.bf16.msra.mxu1 %v2388_v36  ;;  %v798_v27 = vpop.permute.xlu1 %797 }
 0x171   : > { %v2392_v45 = vpack.c.bf16 %v749_v38, %v748_v40  ;;  %v704_v46 = vadd.f32 %v703_v44, %v511_v30  ;;  %v803_v30 = vpop.permute.xlu0 %802 }
 0x172   : > { %v751_v47 = vmax.f32 %v709_v43, 0.0 }
 0x173   : > { %v750_v48 = vmax.f32 %v704_v46, 0.0  ;;  %v2149_v49 = vpop.f32.mrb[10].mxu0  ;;  %2393 = vmatprep.subr.bf16.mxu1 %v2392_v45 }
 0x174   : > { %v719_v50 = vadd.f32 %v2149_v49, %v526_v39  ;;  %v713_v51 = vpop.f32.mrb[11].mxu0  ;;  %2395 = vmatpush3.bf16.msra.mxu1 %v2392_v45  ;;  %v808_v29 = vpop.permute.xlu1 %807 }
 0x175   : > { %v2396_v53 = vpack.c.bf16 %v751_v47, %v750_v48  ;;  %v714_v54 = vadd.f32 %v713_v51, %v521_v42  ;;  %v813_v32 = vpop.permute.xlu0 %812 }
 0x176   : > { %v753_v56 = vmax.f32 %v719_v50, 0.0 }
 0x177   : > { %v752_v57 = vmax.f32 %v714_v54, 0.0  ;;  %v2152_v58 = vpop.f32.mrb[12].mxu0  ;;  %2397 = vmatprep.subr.bf16.mxu1 %v2396_v53 }
 0x178   : > { %v729_v59 = vadd.f32 %v2152_v58, %v536_v52  ;;  %v723_v60 = vpop.f32.mrb[13].mxu0  ;;  %2399 = vmatpush3.bf16.msra.mxu1 %v2396_v53  ;;  %v818_v31 = vpop.permute.xlu1 %817 }
 0x179   : > { %v2400_v61 = vpack.c.bf16 %v753_v56, %v752_v57  ;;  %v724_v62 = vadd.f32 %v723_v60, %v531_v55  ;;  %v823_v41 = vpop.permute.xlu0 %822 }
 0x17a   : > { %v755_v63 = vmax.f32 %v729_v59, 0.0 }
 0x17b   : > { %v754_v1 = vmax.f32 %v724_v62, 0.0  ;;  %v2155_v2 = vpop.f32.mrb[14].mxu0  ;;  %2401 = vmatprep.subr.bf16.mxu1 %v2400_v61 }
 0x17c   : > { %v739_v4 = vadd.f32 %v2155_v2, %v546_v0  ;;  %v733_v5 = vpop.f32.mrb[15].mxu0  ;;  %2403 = vmatpush3.bf16.msra.mxu1 %v2400_v61  ;;  %v828_v38 = vpop.permute.xlu1 %827 }
 0x17d   : > { %v2404_v6 = vpack.c.bf16 %v755_v63, %v754_v1  ;;  %v734_v7 = vadd.f32 %v733_v5, %v541_v3  ;;  %v833_v54 = vpop.permute.xlu0 %832 }
 0x17e   : > { %v757_v8 = vmax.f32 %v739_v4, 0.0 }
 0x17f   : > { %v756_v9 = vmax.f32 %v734_v7, 0.0  ;;  %2405 = vmatprep.subr.bf16.mxu1 %v2404_v6 }
 0x180   : > { %2407 = vmatpush3.bf16.msra.mxu1 %v2404_v6  ;;  %v838_v51 = vpop.permute.xlu1 %837 }
 0x181   : > { %v2408_v10 = vpack.c.bf16 %v757_v8, %v756_v9  ;;  %v843_v2 = vpop.permute.xlu0 %842 }
 0x183   : > { %2409 = vmatprep.subr.bf16.mxu1 %v2408_v10 }
 0x184   : > { %2411 = vmatpush3.bf16.msra.mxu1 %v2408_v10  ;;  %v848_v63 = vpop.permute.xlu1 %847 }
 0x187   : > { %2189 = vmatmul.mubr.f32.vlgmr.msra.gmra.mrb[0].mxu1 %v759_v11 }
 0x188   : > { %2191 = vmatprep.mubr.f32.mxu1 %v760_v12  ;;  %v858_v12 = vpop.permute.xlu1 %857 }
 0x18b   : > { %2192 = vmatmul.mubr.f32.gmra.mrb[2].mxu1 %v761_v13 }
 0x18c   : > { %2194 = vmatprep.mubr.f32.mxu1 %v762_v14 }
 0x18f   : > { %2195 = vmatmul.mubr.f32.gmra.mrb[4].mxu1 %v763_v15  ;;  %v853_v15 = vpop.permute.xlu0 %852 }
 0x190   : > { %2197 = vmatprep.mubr.f32.mxu1 %v764_v16 }
 0x193   : > { %2198 = vmatmul.mubr.f32.gmra.mrb[6].mxu1 %v765_v17 }
 0x194   : > { %2200 = vmatprep.mubr.f32.mxu1 %v766_v18 }
 0x197   : > { %2201 = vmatmul.mubr.f32.gmra.mrb[8].mxu1 %v767_v19 }
 0x198   : > { %2203 = vmatprep.mubr.f32.mxu1 %v768_v20 }
 0x19b   : > { %2204 = vmatmul.mubr.f32.gmra.mrb[10].mxu1 %v769_v21 }
 0x19c   : > { %2206 = vmatprep.mubr.f32.mxu1 %v770_v22 }
 0x19f   : > { %2207 = vmatmul.mubr.f32.gmra.mrb[12].mxu1 %v771_v23 }
 0x1a0   : > { %2209 = vmatprep.mubr.f32.mxu1 %v772_v24  ;;  %v868_v24 = vpop.permute.xlu1 %867 }
 0x1a3   : > { %2210 = vmatmul.mubr.f32.gmra.mrb[14].mxu1 %v773_v25 }
 0x25a   : > { %v2190_v33 = vpop.f32.mrb[0].mxu1 }
 0x25b   : > { %v942_v34 = vadd.f32 %v2190_v33, %v798_v27  ;;  %v936_v35 = vpop.f32.mrb[1].mxu1  ;;  %v863_v27 = vpop.permute.xlu0 %862 }
 0x25c   : > { %v937_v36 = vadd.f32 %v936_v35, %v793_v28  ;;  %v1032_v35 = vld [vmem:[%s3299_s18 + $0x8] sm:$0xff] }
 0x25d   : > { %v1016_v37 = vmax.f32 %v942_v34, 0.0 }
 0x25e   : > { %v1015_v39 = vmax.f32 %v937_v36, 0.0  ;;  %v2193_v40 = vpop.f32.mrb[2].mxu1  ;;  %v1348_v36 = vld [vmem:[%s3308_s5] sm:$0xff] }
 0x25f   : > { %v952_v42 = vadd.f32 %v2193_v40, %v808_v29  ;;  %v946_v43 = vpop.f32.mrb[3].mxu1  ;;  %2300 = vmatprep.mubr.f32.mxu1 %v1348_v36  ;;  %v1041_v36 = vld [vmem:[%s3299_s18 + $0x50] sm:$0xff] }
 0x260   : > { %v2412_v44 = vpack.c.bf16 %v1016_v37, %v1015_v39  ;;  %v947_v45 = vadd.f32 %v946_v43, %v803_v30 }
 0x261   : > { %v1018_v46 = vmax.f32 %v952_v42, 0.0 }
 0x262   : > { %v1017_v47 = vmax.f32 %v947_v45, 0.0  ;;  %v2196_v48 = vpop.f32.mrb[4].mxu1  ;;  %2413 = vmatprep.subr.bf16.mxu0 %v2412_v44 }
 0x263   : > { %v962_v49 = vadd.f32 %v2196_v48, %v818_v31  ;;  %v956_v50 = vpop.f32.mrb[5].mxu1  ;;  %2415 = vmatpush3.bf16.msra.mxu0 %v2412_v44 }
 0x264   : > { %v2416_v52 = vpack.c.bf16 %v1018_v46, %v1017_v47  ;;  %v957_v53 = vadd.f32 %v956_v50, %v813_v32 }
 0x265   : > { %v1020_v55 = vmax.f32 %v962_v49, 0.0 }
 0x266   : > { %v1019_v56 = vmax.f32 %v957_v53, 0.0  ;;  %v2199_v57 = vpop.f32.mrb[6].mxu1  ;;  %2417 = vmatprep.subr.bf16.mxu0 %v2416_v52 }
 0x267   : > { %v972_v58 = vadd.f32 %v2199_v57, %v828_v38  ;;  %v966_v59 = vpop.f32.mrb[7].mxu1  ;;  %2419 = vmatpush3.bf16.msra.mxu0 %v2416_v52 }
 0x268   : > { %v2420_v60 = vpack.c.bf16 %v1020_v55, %v1019_v56  ;;  %v967_v61 = vadd.f32 %v966_v59, %v823_v41 }
 0x269   : > { %v1022_v62 = vmax.f32 %v972_v58, 0.0 }
 0x26a   : > { %v1021_v0 = vmax.f32 %v967_v61, 0.0  ;;  %v2202_v1 = vpop.f32.mrb[8].mxu1  ;;  %2421 = vmatprep.subr.bf16.mxu0 %v2420_v60 }
 0x26b   : > { %v982_v3 = vadd.f32 %v2202_v1, %v838_v51  ;;  %v976_v4 = vpop.f32.mrb[9].mxu1  ;;  %2423 = vmatpush3.bf16.msra.mxu0 %v2420_v60 }
 0x26c   : > { %v2424_v5 = vpack.c.bf16 %v1022_v62, %v1021_v0  ;;  %v977_v6 = vadd.f32 %v976_v4, %v833_v54 }
 0x26d   : > { %v1024_v7 = vmax.f32 %v982_v3, 0.0 }
 0x26e   : > { %v1023_v8 = vmax.f32 %v977_v6, 0.0  ;;  %v2205_v9 = vpop.f32.mrb[10].mxu1  ;;  %2425 = vmatprep.subr.bf16.mxu0 %v2424_v5 }
 0x26f   : > { %v992_v10 = vadd.f32 %v2205_v9, %v848_v63  ;;  %v986_v11 = vpop.f32.mrb[11].mxu1  ;;  %2427 = vmatpush3.bf16.msra.mxu0 %v2424_v5 }
 0x270   : > { %v2428_v13 = vpack.c.bf16 %v1024_v7, %v1023_v8  ;;  %v987_v14 = vadd.f32 %v986_v11, %v843_v2 }
 0x271   : > { %v1026_v16 = vmax.f32 %v992_v10, 0.0 }
 0x272   : > { %v1025_v17 = vmax.f32 %v987_v14, 0.0  ;;  %v2208_v18 = vpop.f32.mrb[12].mxu1  ;;  %2429 = vmatprep.subr.bf16.mxu0 %v2428_v13  ;;  %v1350_v14 = vld [vmem:[%s3308_s5 + $0x10] sm:$0xff] }
 0x273   : > { %v1002_v19 = vadd.f32 %v2208_v18, %v858_v12  ;;  %v996_v20 = vpop.f32.mrb[13].mxu1  ;;  %2431 = vmatpush3.bf16.msra.mxu0 %v2428_v13  ;;  %v1349_v13 = vld [vmem:[%s3308_s5 + $0x8] sm:$0xff]  ;;  %v1354_v18 = vld [vmem:[%s3308_s5 + $0x30] sm:$0xff] }
 0x274   : > { %v2432_v21 = vpack.c.bf16 %v1026_v16, %v1025_v17  ;;  %v997_v22 = vadd.f32 %v996_v20, %v853_v15  ;;  %v1351_v15 = vld [vmem:[%s3308_s5 + $0x18] sm:$0xff]  ;;  %v1352_v16 = vld [vmem:[%s3308_s5 + $0x20] sm:$0xff]  ;;  %v1353_v17 = vld [vmem:[%s3308_s5 + $0x28] sm:$0xff] }
 0x275   : > { %v1028_v23 = vmax.f32 %v1002_v19, 0.0  ;;  %v1355_v19 = vld [vmem:[%s3308_s5 + $0x38] sm:$0xff]  ;;  %v1356_v20 = vld [vmem:[%s3308_s5 + $0x40] sm:$0xff] }
 0x276   : > { %v1027_v25 = vmax.f32 %v997_v22, 0.0  ;;  %v2211_v26 = vpop.f32.mrb[14].mxu1  ;;  %2433 = vmatprep.subr.bf16.mxu0 %v2432_v21  ;;  %v1358_v22 = vld [vmem:[%s3308_s5 + $0x50] sm:$0xff] }
 0x277   : > { %v1012_v28 = vadd.f32 %v2211_v26, %v868_v24  ;;  %v1006_v29 = vpop.f32.mrb[15].mxu1  ;;  %2435 = vmatpush3.bf16.msra.mxu0 %v2432_v21  ;;  %v1357_v21 = vld [vmem:[%s3308_s5 + $0x48] sm:$0xff]  ;;  %v1360_v24 = vld [vmem:[%s3308_s5 + $0x60] sm:$0xff]  ;;  %v1362_v26 = vld [vmem:[%s3308_s5 + $0x70] sm:$0xff] }
 0x278   : > { %v2436_v30 = vpack.c.bf16 %v1028_v23, %v1027_v25  ;;  %v1007_v31 = vadd.f32 %v1006_v29, %v863_v27  ;;  %v1359_v23 = vld [vmem:[%s3308_s5 + $0x58] sm:$0xff]  ;;  %v1361_v25 = vld [vmem:[%s3308_s5 + $0x68] sm:$0xff] }
 0x279   : > { %v1030_v32 = vmax.f32 %v1012_v28, 0.0  ;;  %v1363_v27 = vld [vmem:[%s3308_s5 + $0x78] sm:$0xff]  ;;  %v1033_v28 = vld [vmem:[%s3299_s18 + $0x10] sm:$0xff] }
 0x27a   : > { %v1029_v33 = vmax.f32 %v1007_v31, 0.0  ;;  %2437 = vmatprep.subr.bf16.mxu0 %v2436_v30  ;;  %v1034_v29 = vld [vmem:[%s3299_s18 + $0x18] sm:$0xff]  ;;  %v1036_v31 = vld [vmem:[%s3299_s18 + $0x28] sm:$0xff] }
 0x27b   : > { %2439 = vmatpush3.bf16.msra.mxu0 %v2436_v30  ;;  %v1035_v30 = vld [vmem:[%s3299_s18 + $0x20] sm:$0xff] }
 0x27c   : > { %v2440_v34 = vpack.c.bf16 %v1030_v32, %v1029_v33  ;;  %v1037_v32 = vld [vmem:[%s3299_s18 + $0x30] sm:$0xff]  ;;  %v1038_v33 = vld [vmem:[%s3299_s18 + $0x38] sm:$0xff] }
 0x27e   : > { %2441 = vmatprep.subr.bf16.mxu0 %v2440_v34 }
 0x27f   : > { %2443 = vmatpush3.bf16.msra.mxu0 %v2440_v34  ;;  %v1039_v34 = vld [vmem:[%s3299_s18 + $0x40] sm:$0xff] }
 0x282   : > { %2245 = vmatmul.mubr.f32.vlgmr.msra.gmra.mrb[16].mxu0 %v1032_v35  ;;  %v1040_v35 = vld [vmem:[%s3299_s18 + $0x48] sm:$0xff] }
 0x283   : > { %2247 = vmatprep.mubr.f32.mxu0 %v1033_v28 }
 0x286   : > { %2248 = vmatmul.mubr.f32.gmra.mrb[18].mxu0 %v1034_v29 }
 0x287   : > { %2250 = vmatprep.mubr.f32.mxu0 %v1035_v30 }
 0x28a   : > { %2251 = vmatmul.mubr.f32.gmra.mrb[20].mxu0 %v1036_v31 }
 0x28b   : > { %2253 = vmatprep.mubr.f32.mxu0 %v1037_v32  ;;  %v1549_v32 = vpop.permute.xlu1 %1548 }
 0x28e   : > { %2254 = vmatmul.mubr.f32.gmra.mrb[22].mxu0 %v1038_v33  ;;  %v1544_v33 = vpop.permute.xlu0 %1543 }
 0x28f   : > { %2256 = vmatprep.mubr.f32.mxu0 %v1039_v34  ;;  %v1559_v34 = vpop.permute.xlu1 %1558 }
 0x292   : > { %2257 = vmatmul.mubr.f32.gmra.mrb[24].mxu0 %v1040_v35  ;;  %v1554_v35 = vpop.permute.xlu0 %1553 }
 0x293   : > { %2259 = vmatprep.mubr.f32.mxu0 %v1041_v36  ;;  %v1569_v36 = vpop.permute.xlu1 %1568 }
 0x355   : > { %v2246_v37 = vpop.f32.mrb[16].mxu0 }
 0x356   : > { %v1113_v38 = vpop.f32.mrb[17].mxu0  ;;  %v1042_v37 = vld [vmem:[%s3299_s18 + $0x58] sm:$0xff] }
 0x357   : > { %v1256_v39 = vrot.slane %v1113_v38, 4  ;;  %2260 = vmatmul.mubr.f32.gmra.mrb[26].mxu0 %v1042_v37  ;;  %v1564_v37 = vpop.permute.xlu0 %1563 }
 0x359   : > { %v1257_v40 = vmax.f32 %v1113_v38, %v1256_v39  ;;  %v1044_v39 = vld [vmem:[%s3299_s18 + $0x68] sm:$0xff] }
 0x35b   : > { %v1258_v41 = vrot.slane %v1257_v40, 2 }
 0x35d   : > { %v1259_v42 = vmax.f32 %v1257_v40, %v1258_v41  ;;  %v1045_v40 = vld [vmem:[%s3299_s18 + $0x70] sm:$0xff]  ;;  %v1046_v41 = vld [vmem:[%s3299_s18 + $0x78] sm:$0xff] }
 0x35f   : > { %v1260_v43 = vrot.slane %v1259_v42, 1 }
 0x361   : > { %v1261_v44 = vmax.f32 %v1259_v42, %v1260_v43  ;;  %v1509_v42 = vld [vmem:[#allocation7] sm:$0xff] }
 0x363   : > { %v1262_v45 = vsub.f32 %v1113_v38, %v1261_v44  ;;  %v1263_v46 = vsub.f32 -inf, %v1261_v44  ;;  %v1043_v38 = vld [vmem:[%s3299_s18 + $0x60] sm:$0xff]  ;;  %s2707_s18 = scalar_lea.vmem %s3365_s13, 2048 }
 0x364   : > { %2262 = vmatprep.mubr.f32.mxu0 %v1043_v38  ;;  %p2708_p5 = scmp.ne.s32.totalorder %s3365_s13, %s2707_s18  ;;  %p2715_p2 = scmp.lt.s32.totalorder %s2713_s1, %s2707_s18 }
 0x365   : > { %v1278_v47 = vmul.f32 1.442695, %v1262_v45  ;;  %v1280_v48 = vmul.f32 1.442695, %v1263_v46  ;;  %2263 = vmatmul.mubr.f32.gmra.mrb[28].mxu0 %v1044_v39 }
 0x366   : > { %2265 = vmatprep.mubr.f32.mxu0 %v1045_v40  ;;  %p2709_p7 = pnand %p2708_p5, %p3007_p9  ;;  %p2716_p6 = por %p2715_p2, %p2714_p13 }
 0x367   : > { %2615 = vpow2.f32 %v1278_v47 }
 0x368   : > { %2617 = vpow2.f32 %v1280_v48  ;;  %p2710_p12 = pneg %p2709_p7 }
 0x369   : > { %2266 = vmatmul.mubr.f32.gmra.mrb[30].mxu0 %v1046_v41 }
 0x36a   : > { %2356 = vmatprep.mubr.f32.mxu0 %v1509_v42  ;;  %p2717_p11 = pnand %p2716_p6, %p2710_p12 }
 0x371   : > { %v2616_v49 = vpop.eup %2615 }
 0x372   : > { %v2618_v50 = vpop.eup %2617 }
 0x373   : > { %v1310_v51 = vadd.f32 %v2618_v50, %v2616_v49 }
 0x375   : > { %v1311_v52 = vadd.f32 %v2618_v50, %v1310_v51 }
 0x377   : > { %v1312_v53 = vadd.f32 %v2618_v50, %v1311_v52 }
 0x379   : > { %v1313_v54 = vadd.f32 %v2618_v50, %v1312_v53 }
 0x37b   : > { %v1314_v55 = vadd.f32 %v2618_v50, %v1313_v54 }
 0x37d   : > { %v1315_v56 = vadd.f32 %v2618_v50, %v1314_v55 }
 0x37f   : > { %v1316_v57 = vadd.f32 %v2618_v50, %v1315_v56 }
 0x381   : > { %v1317_v58 = vadd.f32 %v2618_v50, %v1316_v57 }
 0x383   : > { %v1318_v59 = vadd.f32 %v2618_v50, %v1317_v58 }
 0x385   : > { %v1319_v60 = vadd.f32 %v2618_v50, %v1318_v59 }
 0x387   : > { %v1320_v61 = vadd.f32 %v2618_v50, %v1319_v60 }
 0x389   : > { %v1321_v62 = vadd.f32 %v2618_v50, %v1320_v61 }
 0x38b   : > { %v1322_v63 = vadd.f32 %v2618_v50, %v1321_v62 }
 0x38d   : > { %v1323_v0 = vadd.f32 %v2618_v50, %v1322_v63 }
 0x38f   : > { %v1324_v1 = vadd.f32 %v2618_v50, %v1323_v0 }
 0x391   : > { %v1325_v2 = vrot.slane %v1324_v1, 4 }
 0x393   : > { %v1326_v3 = vadd.f32 %v1325_v2, %v1324_v1 }
 0x395   : > { %v1327_v4 = vrot.slane %v1326_v3, 2 }
 0x397   : > { %v1328_v5 = vadd.f32 %v1327_v4, %v1326_v3  ;;  %v1510_v3 = vld [vmem:[#allocation7 + $0x8] sm:$0xff]  ;;  %v1511_v4 = vld [vmem:[#allocation7 + $0x10] sm:$0xff] }
 0x399   : > { %v1329_v6 = vrot.slane %v1328_v5, 1 }
 0x39b   : > { %v1330_v7 = vadd.f32 %v1329_v6, %v1328_v5  ;;  %v1512_v5 = vld [vmem:[#allocation7 + $0x18] sm:$0xff]  ;;  %v1513_v6 = vld [vmem:[#allocation7 + $0x20] sm:$0xff] }
 0x39d   : > { %2619 = vrcp.f32 %v1330_v7  ;;  %v1514_v7 = vld [vmem:[#allocation7 + $0x28] sm:$0xff] }
 0x3a7   : > { %v2620_v8 = vpop.eup %2619 }
 0x3a8   : > { %v1332_v9 = vmul.f32 %v2620_v8, %v2616_v49  ;;  %v1333_v10 = vmul.f32 %v2620_v8, %v2618_v50  ;;  %v1515_v8 = vld [vmem:[#allocation7 + $0x30] sm:$0xff] }
 0x3aa   : > { %v2444_v11 = vpack.c.bf16 %v1333_v10, %v1332_v9  ;;  %v2448_v12 = vpack.c.bf16 %v1333_v10, %v1333_v10  ;;  %v1516_v9 = vld [vmem:[#allocation7 + $0x38] sm:$0xff]  ;;  %v1517_v10 = vld [vmem:[#allocation7 + $0x40] sm:$0xff] }
 0x3ac   : > { %2445 = vmatprep.subr.bf16.mxu1 %v2444_v11 }
 0x3ad   : > { %2447 = vmatpush3.bf16.msra.mxu1 %v2444_v11  ;;  %v1518_v11 = vld [vmem:[#allocation7 + $0x48] sm:$0xff] }
 0x3ae   : > { %2449 = vmatprep.subr.bf16.mxu1 %v2448_v12 }
 0x3b1   : > { %2451 = vmatpush3.bf16.msra.mxu1 %v2448_v12 }
 0x3b2   : > { %2453 = vmatprep.subr.bf16.mxu1 %v2448_v12 }
 0x3b5   : > { %2455 = vmatpush3.bf16.msra.mxu1 %v2448_v12 }
 0x3b6   : > { %2457 = vmatprep.subr.bf16.mxu1 %v2448_v12 }
 0x3b9   : > { %2459 = vmatpush3.bf16.msra.mxu1 %v2448_v12 }
 0x3ba   : > { %2461 = vmatprep.subr.bf16.mxu1 %v2448_v12 }
 0x3bd   : > { %2463 = vmatpush3.bf16.msra.mxu1 %v2448_v12 }
 0x3be   : > { %2465 = vmatprep.subr.bf16.mxu1 %v2448_v12 }
 0x3c1   : > { %2467 = vmatpush3.bf16.msra.mxu1 %v2448_v12 }
 0x3c2   : > { %2469 = vmatprep.subr.bf16.mxu1 %v2448_v12 }
 0x3c5   : > { %2471 = vmatpush3.bf16.msra.mxu1 %v2448_v12 }
 0x3c6   : > { %2473 = vmatprep.subr.bf16.mxu1 %v2448_v12 }
 0x3c9   : > { %2475 = vmatpush3.bf16.msra.mxu1 %v2448_v12  ;;  %v1519_v12 = vld [vmem:[#allocation7 + $0x50] sm:$0xff] }
 0x3cc   : > { %2301 = vmatmul.mubr.f32.vlgmr.msra.gmra.mrb[16].mxu1 %v1349_v13  ;;  %v1520_v13 = vld [vmem:[#allocation7 + $0x58] sm:$0xff] }
 0x3cd   : > { %2303 = vmatprep.mubr.f32.mxu1 %v1350_v14  ;;  %v1521_v14 = vld [vmem:[#allocation7 + $0x60] sm:$0xff] }
 0x3d0   : > { %2304 = vmatmul.mubr.f32.gmra.mrb[18].mxu1 %v1351_v15  ;;  %v1522_v15 = vld [vmem:[#allocation7 + $0x68] sm:$0xff] }
 0x3d1   : > { %2306 = vmatprep.mubr.f32.mxu1 %v1352_v16  ;;  %v1523_v16 = vld [vmem:[#allocation7 + $0x70] sm:$0xff] }
 0x3d4   : > { %2307 = vmatmul.mubr.f32.gmra.mrb[20].mxu1 %v1353_v17  ;;  %v1524_v17 = vld [vmem:[#allocation7 + $0x78] sm:$0xff] }
 0x3d5   : > { %2309 = vmatprep.mubr.f32.mxu1 %v1354_v18  ;;  %v2249_v18 = vpop.f32.mrb[18].mxu0 }
 0x3d8   : > { %2310 = vmatmul.mubr.f32.gmra.mrb[22].mxu1 %v1355_v19  ;;  %v1123_v19 = vpop.f32.mrb[19].mxu0 }
 0x3d9   : > { %2312 = vmatprep.mubr.f32.mxu1 %v1356_v20  ;;  %v2252_v20 = vpop.f32.mrb[20].mxu0 }
 0x3dc   : > { %2313 = vmatmul.mubr.f32.gmra.mrb[24].mxu1 %v1357_v21  ;;  %v1133_v21 = vpop.f32.mrb[21].mxu0 }
 0x3dd   : > { %2315 = vmatprep.mubr.f32.mxu1 %v1358_v22  ;;  %v2255_v22 = vpop.f32.mrb[22].mxu0 }
 0x3e0   : > { %2316 = vmatmul.mubr.f32.gmra.mrb[26].mxu1 %v1359_v23  ;;  %v1143_v23 = vpop.f32.mrb[23].mxu0 }
 0x3e1   : > { %2318 = vmatprep.mubr.f32.mxu1 %v1360_v24  ;;  %v2258_v24 = vpop.f32.mrb[24].mxu0 }
 0x3e4   : > { %2319 = vmatmul.mubr.f32.gmra.mrb[28].mxu1 %v1361_v25  ;;  %v1153_v25 = vpop.f32.mrb[25].mxu0 }
 0x3e5   : > { %2321 = vmatprep.mubr.f32.mxu1 %v1362_v26 }
 0x3e8   : > { %2322 = vmatmul.mubr.f32.gmra.mrb[30].mxu1 %v1363_v27 }
 0x42a   : > { %v2261_v26 = vpop.f32.mrb[26].mxu0 }
 0x42b   : > { %v1163_v27 = vpop.f32.mrb[27].mxu0 }
 0x438   : > { %v2264_v28 = vpop.f32.mrb[28].mxu0 }
 0x439   : > { %v1173_v29 = vpop.f32.mrb[29].mxu0 }
 0x43c   : > { %v2267_v30 = vpop.f32.mrb[30].mxu0 }
 0x43d   : > { %v1183_v31 = vpop.f32.mrb[31].mxu0 }
 0x49f   : > { %v2302_v43 = vpop.f32.mrb[16].mxu1 }
 0x4a0   : > { %v1430_v44 = vpop.f32.mrb[17].mxu1 }
 0x4a1   : > { %v2476_v45 = vpack.c.bf16 %v2302_v43, %v1430_v44  ;;  %v1579_v43 = vpop.permute.xlu1 %1578 }
 0x4a3   : > { %v2305_v46 = vpop.f32.mrb[18].mxu1  ;;  %2477 = vmatprep.subr.bf16.mxu0 %v2476_v45 }
 0x4a4   : > { %v1440_v47 = vpop.f32.mrb[19].mxu1  ;;  %2479 = vmatpush3.bf16.msra.mxu0 %v2476_v45 }
 0x4a5   : > { %v2480_v48 = vpack.c.bf16 %v2305_v46, %v1440_v47  ;;  %v1574_v46 = vpop.permute.xlu0 %1573 }
 0x4a7   : > { %v2308_v49 = vpop.f32.mrb[20].mxu1  ;;  %2481 = vmatprep.subr.bf16.mxu0 %v2480_v48 }
 0x4a8   : > { %v1450_v50 = vpop.f32.mrb[21].mxu1  ;;  %2483 = vmatpush3.bf16.msra.mxu0 %v2480_v48 }
 0x4a9   : > { %v2484_v51 = vpack.c.bf16 %v2308_v49, %v1450_v50 }
 0x4ab   : > { %v2311_v52 = vpop.f32.mrb[22].mxu1  ;;  %2485 = vmatprep.subr.bf16.mxu0 %v2484_v51 }
 0x4ac   : > { %v1460_v53 = vpop.f32.mrb[23].mxu1  ;;  %2487 = vmatpush3.bf16.msra.mxu0 %v2484_v51 }
 0x4ad   : > { %v2488_v54 = vpack.c.bf16 %v2311_v52, %v1460_v53 }
 0x4af   : > { %v2314_v55 = vpop.f32.mrb[24].mxu1  ;;  %2489 = vmatprep.subr.bf16.mxu0 %v2488_v54 }
 0x4b0   : > { %v1470_v56 = vpop.f32.mrb[25].mxu1  ;;  %2491 = vmatpush3.bf16.msra.mxu0 %v2488_v54 }
 0x4b1   : > { %v2492_v57 = vpack.c.bf16 %v2314_v55, %v1470_v56  ;;  %v1589_v55 = vpop.permute.xlu1 %1588 }
 0x4b3   : > { %v2317_v58 = vpop.f32.mrb[26].mxu1  ;;  %2493 = vmatprep.subr.bf16.mxu0 %v2492_v57 }
 0x4b4   : > { %v1480_v59 = vpop.f32.mrb[27].mxu1  ;;  %2495 = vmatpush3.bf16.msra.mxu0 %v2492_v57  ;;  %v1584_v57 = vpop.permute.xlu0 %1583 }
 0x4b5   : > { %v2496_v60 = vpack.c.bf16 %v2317_v58, %v1480_v59 }
 0x4b7   : > { %v2320_v61 = vpop.f32.mrb[28].mxu1  ;;  %2497 = vmatprep.subr.bf16.mxu0 %v2496_v60 }
 0x4b8   : > { %v1490_v62 = vpop.f32.mrb[29].mxu1  ;;  %2499 = vmatpush3.bf16.msra.mxu0 %v2496_v60 }
 0x4b9   : > { %v2500_v63 = vpack.c.bf16 %v2320_v61, %v1490_v62 }
 0x4bb   : > { %v2323_v0 = vpop.f32.mrb[30].mxu1  ;;  %2501 = vmatprep.subr.bf16.mxu0 %v2500_v63 }
 0x4bc   : > { %v1500_v1 = vpop.f32.mrb[31].mxu1  ;;  %2503 = vmatpush3.bf16.msra.mxu0 %v2500_v63 }
 0x4bd   : > { %v2504_v2 = vpack.c.bf16 %v2323_v0, %v1500_v1  ;;  %v1599_v1 = vpop.permute.xlu1 %1598 }
 0x4bf   : > { %2505 = vmatprep.subr.bf16.mxu0 %v2504_v2 }
 0x4c0   : > { %2507 = vmatpush3.bf16.msra.mxu0 %v2504_v2 }
 0x4c3   : > { %2357 = vmatmul.mubr.f32.vlgmr.msra.gmra.mrb[32].mxu0 %v1510_v3 }
 0x4c4   : > { %2359 = vmatprep.mubr.f32.mxu0 %v1511_v4  ;;  %v1594_v4 = vpop.permute.xlu0 %1593 }
 0x4c7   : > { %2360 = vmatmul.mubr.f32.gmra.mrb[34].mxu0 %v1512_v5 }
 0x4c8   : > { %2362 = vmatprep.mubr.f32.mxu0 %v1513_v6 }
 0x4cb   : > { %2363 = vmatmul.mubr.f32.gmra.mrb[36].mxu0 %v1514_v7 }
 0x4cc   : > { %2365 = vmatprep.mubr.f32.mxu0 %v1515_v8 }
 0x4cf   : > { %2366 = vmatmul.mubr.f32.gmra.mrb[38].mxu0 %v1516_v9 }
 0x4d0   : > { %2368 = vmatprep.mubr.f32.mxu0 %v1517_v10 }
 0x4d3   : > { %2369 = vmatmul.mubr.f32.gmra.mrb[40].mxu0 %v1518_v11 }
 0x4d4   : > { %2371 = vmatprep.mubr.f32.mxu0 %v1519_v12 }
 0x4d7   : > { %2372 = vmatmul.mubr.f32.gmra.mrb[42].mxu0 %v1520_v13  ;;  %v1609_v13 = vpop.permute.xlu1 %1608 }
 0x4d8   : > { %2374 = vmatprep.mubr.f32.mxu0 %v1521_v14 }
 0x4db   : > { %2375 = vmatmul.mubr.f32.gmra.mrb[44].mxu0 %v1522_v15  ;;  %v1604_v15 = vpop.permute.xlu0 %1603  ;;  %v1619_v23 = vpop.permute.xlu1 %1618 }
 0x4dc   : > { %2377 = vmatprep.mubr.f32.mxu0 %v1523_v16 }
 0x4df   : > { %2378 = vmatmul.mubr.f32.gmra.mrb[46].mxu0 %v1524_v17  ;;  %v1614_v26 = vpop.permute.xlu0 %1613 }
 0x596   : > { %v2358_v38 = vpop.f32.mrb[32].mxu0 }
 0x597   : > { %v1693_v39 = vadd.f32 %v2358_v38, %v1549_v32  ;;  %v1687_v40 = vpop.f32.mrb[33].mxu0 }
 0x598   : > { %v1688_v41 = vadd.f32 %v1687_v40, %v1544_v33 }
 0x599   : > { %v1767_v42 = vmax.f32 %v1693_v39, 0.0 }
 0x59a   : > { %v1766_v44 = vmax.f32 %v1688_v41, 0.0  ;;  %v2361_v45 = vpop.f32.mrb[34].mxu0 }
 0x59b   : > { %1783 = vst [vmem:[%s3341_s21 + $0x8] sm:$0xff] %v1767_v42  ;;  %v1703_v47 = vadd.f32 %v2361_v45, %v1559_v34  ;;  %v1697_v48 = vpop.f32.mrb[35].mxu0 }
 0x59c   : > { %1782 = vst [vmem:[%s3341_s21] sm:$0xff] %v1766_v44  ;;  %v1698_v49 = vadd.f32 %v1697_v48, %v1554_v35 }
 0x59d   : > { %v1769_v50 = vmax.f32 %v1703_v47, 0.0 }
 0x59e   : > { %v1768_v51 = vmax.f32 %v1698_v49, 0.0  ;;  %v2364_v52 = vpop.f32.mrb[36].mxu0 }
 0x59f   : > { %1785 = vst [vmem:[%s3341_s21 + $0x18] sm:$0xff] %v1769_v50  ;;  %v1713_v53 = vadd.f32 %v2364_v52, %v1569_v36  ;;  %v1707_v54 = vpop.f32.mrb[37].mxu0 }
 0x5a0   : > { %1784 = vst [vmem:[%s3341_s21 + $0x10] sm:$0xff] %v1768_v51  ;;  %v1708_v56 = vadd.f32 %v1707_v54, %v1564_v37 }
 0x5a1   : > { %v1771_v58 = vmax.f32 %v1713_v53, 0.0 }
 0x5a2   : > { %v1770_v59 = vmax.f32 %v1708_v56, 0.0  ;;  %v2367_v60 = vpop.f32.mrb[38].mxu0 }
 0x5a3   : > { %1787 = vst [vmem:[%s3341_s21 + $0x28] sm:$0xff] %v1771_v58  ;;  %v1723_v61 = vadd.f32 %v2367_v60, %v1579_v43  ;;  %v1717_v62 = vpop.f32.mrb[39].mxu0 }
 0x5a4   : > { %1786 = vst [vmem:[%s3341_s21 + $0x20] sm:$0xff] %v1770_v59  ;;  %v1718_v63 = vadd.f32 %v1717_v62, %v1574_v46 }
 0x5a5   : > { %v1773_v0 = vmax.f32 %v1723_v61, 0.0 }
 0x5a6   : > { %v1772_v2 = vmax.f32 %v1718_v63, 0.0  ;;  %v2370_v3 = vpop.f32.mrb[40].mxu0 }
 0x5a7   : > { %1789 = vst [vmem:[%s3341_s21 + $0x38] sm:$0xff] %v1773_v0  ;;  %v1733_v5 = vadd.f32 %v2370_v3, %v1589_v55  ;;  %v1727_v6 = vpop.f32.mrb[41].mxu0 }
 0x5a8   : > { %1788 = vst [vmem:[%s3341_s21 + $0x30] sm:$0xff] %v1772_v2  ;;  %v1728_v7 = vadd.f32 %v1727_v6, %v1584_v57 }
 0x5a9   : > { %v1775_v8 = vmax.f32 %v1733_v5, 0.0 }
 0x5aa   : > { %v1774_v9 = vmax.f32 %v1728_v7, 0.0  ;;  %v2373_v10 = vpop.f32.mrb[42].mxu0 }
 0x5ab   : > { %1791 = vst [vmem:[%s3341_s21 + $0x48] sm:$0xff] %v1775_v8  ;;  %v1743_v11 = vadd.f32 %v2373_v10, %v1599_v1  ;;  %v1737_v12 = vpop.f32.mrb[43].mxu0 }
 0x5ac   : > { %1790 = vst [vmem:[%s3341_s21 + $0x40] sm:$0xff] %v1774_v9  ;;  %v1738_v14 = vadd.f32 %v1737_v12, %v1594_v4 }
 0x5ad   : > { %v1777_v16 = vmax.f32 %v1743_v11, 0.0 }
 0x5ae   : > { %v1776_v17 = vmax.f32 %v1738_v14, 0.0  ;;  %v2376_v18 = vpop.f32.mrb[44].mxu0 }
 0x5af   : > { %1793 = vst [vmem:[%s3341_s21 + $0x58] sm:$0xff] %v1777_v16  ;;  %v1753_v19 = vadd.f32 %v2376_v18, %v1609_v13  ;;  %v1747_v20 = vpop.f32.mrb[45].mxu0 }
 0x5b0   : > { %1792 = vst [vmem:[%s3341_s21 + $0x50] sm:$0xff] %v1776_v17  ;;  %v1748_v21 = vadd.f32 %v1747_v20, %v1604_v15 }
 0x5b1   : > { %v1779_v22 = vmax.f32 %v1753_v19, 0.0 }
 0x5b2   : > { %v1778_v24 = vmax.f32 %v1748_v21, 0.0  ;;  %v2379_v25 = vpop.f32.mrb[46].mxu0 }
 0x5b3   : > { %1795 = vst [vmem:[%s3341_s21 + $0x68] sm:$0xff] %v1779_v22  ;;  %v1763_v27 = vadd.f32 %v2379_v25, %v1619_v23  ;;  %v1757_v28 = vpop.f32.mrb[47].mxu0 }
 0x5b4   : > { %1794 = vst [vmem:[%s3341_s21 + $0x60] sm:$0xff] %v1778_v24  ;;  %v1758_v29 = vadd.f32 %v1757_v28, %v1614_v26 }
 0x5b5   : > { %v1781_v30 = vmax.f32 %v1763_v27, 0.0 }
 0x5b6   : > { %v1780_v31 = vmax.f32 %v1758_v29, 0.0 }
 0x5b7   : > { %1797 = vst [vmem:[%s3341_s21 + $0x78] sm:$0xff] %v1781_v30 }
 0x5b8   : > { %1796 = vst [vmem:[%s3341_s21 + $0x70] sm:$0xff] %v1780_v31 }
 0x5b9   : > { %2720 = shalt.err (!%p2717_p11)
}
 0x5ba   : > { %s2721_s5 = scalar_lea.hbm %s3363_s2, 2048  ;;  %s2725_s20 = scalar_lea.hbm %s3470_s24, 8192 }
 0x5bb   : > { %p2722_p10 = scmp.ne.s32.totalorder %s3363_s2, %s2721_s5  ;;  %p2726_p4 = scmp.lt.u32.totalorder %s3363_s2, %s3470_s24 }
 0x5bc   : > { %p2727_p3 = scmp.lt.u32.totalorder %s2725_s20, %s2721_s5  ;;  %p2729_p5 = scmp.lt.u32.totalorder %s2721_s5, %s3363_s2 }
 0x5bd   : > { %p2723_p1 = pnand %p2722_p10, %p3007_p9 }
 0x5be   : > { %p2728_p0 = por %p2727_p3, %p2726_p4 }
 0x5bf   : > { %p2724_p8 = pneg %p2723_p1 }
 0x5c0   : > { %p2730_p7 = por %p2729_p5, %p2728_p0 }
 0x5c2   : > { %p2731_p12 = pnand %p2730_p7, %p2724_p8 }
 0x5c4   : > { %2734 = shalt.err (!%p2731_p12)
}
 0x5c5   : > { %s2818_s17 = smov 128   ;;  %s2819_s26 = smov 256  }
 0x5c6   : > { %s2820_s28 = smov 8  }
 0x5c7   : > { %2518 = dma.vmem_to_hbm [thread:$0]  (%p3007_p9), %s3365_s13, 2048, %s3363_s2, %s1799_s9, %s2818_s17, %s2819_s26, %s2820_s28  }
 0x5c8 PF: > { %s3471_s18 = sld [smem:[#allocation12_spill]]  ;;  %s3472_s30 = sld [smem:[#allocation14_spill]] }
 0x5c9   : > { %p2540_p13 = scmp.ge.s32.totalorder %s2809_s16, 2 }
 0x5ce   : > { %s1828_s27 = sand.u32 1, %s3471_s18   ;;  %p3473_p2 = scmp.ne.s32.totalorder %s3472_s30, 0 }
 0x5cf   : > { %s1829_s1 = scalar_lea.sflag [#allocation4], %s1828_s27 }
 0x5d0   : > { %p2532_p6 = pnand %p2540_p13, %p3473_p2 }
 0x5d2   : > { %2776 = dma.done.wait (!%p2532_p6), %s1829_s1, 2048  }
 0x5d3   : > { %2778 = vsyncadd (!%p2532_p6), %s1829_s1, 4294965248  ;;  %s26_s16 = sadd.s32 1, %s2809_s16   ;;  %s3474_s23 = sld [smem:[#allocation15_spill]] }
 0x5d4   : > { %p23_p11 = scmp.ge.s32.totalorder %s26_s16, 6   ;;  %s3475_s30 = smov %s2785_s10 }
 0x5d5   : > { %s3476_s10 = smov %s2789_s11  ;;  %s3477_s11 = smov %s3024_s7 }
 0x5d6   : > { %s3478_s12 = smov %s2801_s14  ;;  %s3479_s13 = smov %s2805_s15 }
 0x5d7   : > { %s3481_s15 = smov %s3487_s25  ;;  %25 = sbr.rel (!%p23_p11) target bundleno = 14 (0xe), region = 115 }
 0x5d9   : > { %s3480_s14 = smov %s3474_s23 }
 0x5de   :  { %1834 = vsyncpa [#allocation3], 1 }
 0x5df   :  { %1836 = vsyncpa [#allocation3 + $0x1], 1 }
 0x5e0   :  { %1837 = vsyncpa [#allocation6], 1 }
 0x5e1   :  { %1838 = vsyncpa [#allocation4], 1 }
 0x5e2   :  { %1840 = vsyncpa [#allocation4 + $0x1], 1 }

</bundles_post_ra>
